<compile_context>
chip_gen: v6e
topology: v6e:2x2x1
jax: 0.10.0
libtpu: 0.0.40
codegen_flags: <defaults>
</compile_context>

<pallas_src>
import functools

import jax
import jax.numpy as jnp
from jax.experimental import pallas as pl
from jax.experimental.pallas import tpu as pltpu

N_INPUT = 128
N_HIDDEN = 32
N_LAYERS = 2
DROPOUT_P = 0.5                 # identity in eval / inference mode
MATMUL_DTYPE = jnp.bfloat16     # MXU-native; accumulation stays f32


# ----------------------------------------------------------------------------
# Fused kernel: skewed 2-layer LSTM recurrence -> fc + log_softmax
# ----------------------------------------------------------------------------
def _charnn_kernel(x_ref, w_ref, b_ref, state_ref,
                   out_ref, stateT_ref, y1_sc, *, T, B, H, I):
    f32 = jnp.float32
    bf16 = jnp.bfloat16

    # --- static slab views (zero-cost), loop-held weights loaded once ------
    whh0 = w_ref[I:I + H, :]                # (H, 4H) bf16
    wih1 = w_ref[I + H:I + 2 * H, :]        # (H, 4H) bf16
    whh1 = w_ref[I + 2 * H:I + 3 * H, :]    # (H, 4H) bf16
    b0 = b_ref[0:1, :]                      # (1, 4H) f32
    b1 = jnp.broadcast_to(b_ref[1:2, :], (B, 4 * H))   # hoisted broadcast

    # --- hoisted layer-0 input projection over ALL time steps --------------
    # (T*B, I)bf16 @ (I, 4H)bf16 -> f32; bias folded once.  Time-major rows.
    gx0 = jnp.dot(x_ref[...], w_ref[0:I, :],
                  preferred_element_type=f32) + b0      # (T*B, 4H)

    # --- initial state: rows [h_l0 | h_l1 | c_l0 | c_l1] --------------------
    h0 = state_ref[0:B, :]
    h1 = state_ref[B:2 * B, :]
    c0 = state_ref[2 * B:3 * B, :]
    c1 = state_ref[3 * B:4 * B, :]

    def cell(gates, c_prev):
        # PyTorch gate order [i, f, g, o].  Two full-width EUP passes on the
        # whole (B, 4H) tile instead of four narrow quarter-width ones.
        sig = jax.nn.sigmoid(gates)
        tnh = jnp.tanh(gates)
        i_g = sig[:, 0:H]
        f_g = sig[:, H:2 * H]
        g_g = tnh[:, 2 * H:3 * H]
        o_g = sig[:, 3 * H:4 * H]
        c_new = f_g * c_prev + i_g * g_g
        h_new = o_g * jnp.tanh(c_new)
        return h_new, c_new

    # --- software-skewed recurrence -----------------------------------------
    # Iteration t runs layer-0 step t together with layer-1 step t-1; both
    # consume only previous-iteration values, so their matmuls / gate math
    # are independent and overlap.  Inter-layer dropout is identity at
    # inference.
    # TODO(synk): training-mode dropout (Bernoulli masks) not implemented.

    # prologue: layer-0 step 0
    g0 = gx0[0:B, :] + jnp.dot(h0.astype(bf16), whh0,
                               preferred_element_type=f32)
    h0, c0 = cell(g0, c0)

    for t in range(1, T):                    # static unroll (T = 8)
        h0_bf = h0.astype(bf16)              # h0 == y0[t-1] here
        h1_bf = h1.astype(bf16)
        g0 = gx0[t * B:(t + 1) * B, :] + jnp.dot(
            h0_bf, whh0, preferred_element_type=f32)
        g1 = (jnp.dot(h0_bf, wih1, preferred_element_type=f32) + b1
              + jnp.dot(h1_bf, whh1, preferred_element_type=f32))
        h1, c1 = cell(g1, c1)                # layer-1 step t-1
        y1_sc[(t - 1) * B:t * B, :] = h1     # contiguous time-major store
        h0, c0 = cell(g0, c0)                # layer-0 step t

    # epilogue: layer-1 step T-1 consumes y0[T-1] (= current h0)
    g1 = (jnp.dot(h0.astype(bf16), wih1, preferred_element_type=f32) + b1
          + jnp.dot(h1.astype(bf16), whh1, preferred_element_type=f32))
    h1, c1 = cell(g1, c1)
    y1_sc[(T - 1) * B:T * B, :] = h1

    # --- final hidden / cell state (same row layout as the input state) ----
    stateT_ref[0:B, :] = h0
    stateT_ref[B:2 * B, :] = h1
    stateT_ref[2 * B:3 * B, :] = c0
    stateT_ref[3 * B:4 * B, :] = c1

    # --- fc + log_softmax, TIME-MAJOR (wrapper does the (T,B)->(B,T) reorder)
    # Post-LSTM dropout is identity in eval mode.
    fc_w = w_ref[I + 3 * H:I + 4 * H, :]     # (H, O) bf16, loaded after loop
    fc_b = b_ref[2:3, :]                     # (1, O)  f32
    logits = jnp.dot(y1_sc[...].astype(bf16), fc_w,
                     preferred_element_type=f32) + fc_b
    m = jnp.max(logits, axis=1, keepdims=True)
    z = logits - m
    lse = jnp.log(jnp.sum(jnp.exp(z), axis=1, keepdims=True))
    out_ref[...] = z - lse


def _charnn_pallas(x_tm, w_slab, b_slab, state_in):
    TB, I = x_tm.shape
    H = N_HIDDEN
    B = state_in.shape[0] // (2 * N_LAYERS)
    T = TB // B

    def full_spec(a):
        nd = a.ndim
        return pl.BlockSpec(tuple(a.shape), lambda i, _n=nd: (0,) * _n)

    kernel = functools.partial(_charnn_kernel, T=T, B=B, H=H, I=I)
    return pl.pallas_call(
        kernel,
        out_shape=(jax.ShapeDtypeStruct((TB, N_INPUT), jnp.float32),       # log-probs (time-major)
                   jax.ShapeDtypeStruct((2 * N_LAYERS * B, H), jnp.float32)),  # [h;c] final state
        grid_spec=pltpu.PrefetchScalarGridSpec(
            num_scalar_prefetch=0,
            grid=(1,),
            in_specs=[full_spec(x_tm), full_spec(w_slab),
                      full_spec(b_slab), full_spec(state_in)],
            out_specs=[pl.BlockSpec((TB, N_INPUT), lambda i: (0, 0)),
                       pl.BlockSpec((2 * N_LAYERS * B, H), lambda i: (0, 0))],
            scratch_shapes=[pltpu.VMEM((TB, H), jnp.float32)]),   # layer-1 outputs
        input_output_aliases={3: 1},   # update h/c state in place
        compiler_params=pltpu.CompilerParams(
            dimension_semantics=("arbitrary",)),
    )(x_tm, w_slab, b_slab, state_in)


# ----------------------------------------------------------------------------
# Parameter init (PyTorch-style uniform(-1/sqrt(H), 1/sqrt(H))).
# Returns (packed kernel params, raw f32 params for the pure-JAX reference).
# ----------------------------------------------------------------------------
def init_params(key):
    bound = N_HIDDEN ** -0.5
    raw = {}
    for layer in range(N_LAYERS):
        in_dim = N_INPUT if layer == 0 else N_HIDDEN
        key, k1, k2, k3, k4 = jax.random.split(key, 5)
        raw[f"w_ih{layer}"] = jax.random.uniform(
            k1, (4 * N_HIDDEN, in_dim), jnp.float32, -bound, bound)
        raw[f"w_hh{layer}"] = jax.random.uniform(
            k2, (4 * N_HIDDEN, N_HIDDEN), jnp.float32, -bound, bound)
        raw[f"b_ih{layer}"] = jax.random.uniform(
            k3, (4 * N_HIDDEN,), jnp.float32, -bound, bound)
        raw[f"b_hh{layer}"] = jax.random.uniform(
            k4, (4 * N_HIDDEN,), jnp.float32, -bound, bound)
    key, k5, k6 = jax.random.split(key, 3)
    raw["fc_w"] = jax.random.uniform(k5, (N_INPUT, N_HIDDEN), jnp.float32, -bound, bound)
    raw["fc_b"] = jax.random.uniform(k6, (N_INPUT,), jnp.float32, -bound, bound)

    # One bf16 slab for every matmul operand (all pre-transposed to (in,out)),
    # one f32 slab for the (pre-summed) biases: 2 weight DMAs total.
    w_slab = jnp.concatenate(
        [raw["w_ih0"].T,      # rows 0:128
         raw["w_hh0"].T,      # rows 128:160
         raw["w_ih1"].T,      # rows 160:192
         raw["w_hh1"].T,      # rows 192:224
         raw["fc_w"].T],      # rows 224:256
        axis=0).astype(MATMUL_DTYPE)                                 # (256,128)
    b_slab = jnp.stack(
        [raw["b_ih0"] + raw["b_hh0"],
         raw["b_ih1"] + raw["b_hh1"],
         raw["fc_b"]], axis=0).astype(jnp.float32)                   # (3,128)
    return {"w_slab": w_slab, "b_slab": b_slab}, raw


# ----------------------------------------------------------------------------
# Forward pass equivalent to ChaRNN.forward(x, hidden)   (eval mode)
# ----------------------------------------------------------------------------
def charnn_forward(params, x, hidden):
    """x: (B, T, 128) batch-first.  hidden: (h0, c0), each (N_LAYERS, B, H)."""
    B, T, _ = x.shape
    LB = N_LAYERS * B
    h0, c0 = hidden
    x_tm = (jnp.transpose(x, (1, 0, 2))
            .reshape(T * B, N_INPUT).astype(MATMUL_DTYPE))      # time-major
    state_in = jnp.concatenate(
        [h0.reshape(LB, N_HIDDEN), c0.reshape(LB, N_HIDDEN)],
        axis=0).astype(jnp.float32)                             # (2*LB, H)
    out_tm, state_out = _charnn_pallas(
        x_tm, params["w_slab"], params["b_slab"], state_in)
    # single (T,B)->(B,T) reorder so row order matches PyTorch's
    # r_output.contiguous().view(-1, N_HIDDEN) (batch_first).
    out = (out_tm.reshape(T, B, N_INPUT)
           .swapaxes(0, 1).reshape(B * T, N_INPUT))
    hT = state_out[:LB].reshape(N_LAYERS, B, N_HIDDEN)
    cT = state_out[LB:].reshape(N_LAYERS, B, N_HIDDEN)
    return out, (hT, cT)


# ----------------------------------------------------------------------------
# Pure-JAX f32 reference (PyTorch nn.LSTM semantics, eval mode) for checking.
# ----------------------------------------------------------------------------
def reference_forward(raw, x, h0, c0):
    B, T, _ = x.shape
    H = N_HIDDEN

    def lstm_layer(x_seq, w_ih, w_hh, b_ih, b_hh, h, c):
        ys = []
        for t in range(T):
            gates = x_seq[:, t, :] @ w_ih.T + b_ih + h @ w_hh.T + b_hh
            i_g = jax.nn.sigmoid(gates[:, 0:H])
            f_g = jax.nn.sigmoid(gates[:, H:2 * H])
            g_g = jnp.tanh(gates[:, 2 * H:3 * H])
            o_g = jax.nn.sigmoid(gates[:, 3 * H:4 * H])
            c = f_g * c + i_g * g_g
            h = o_g * jnp.tanh(c)
            ys.append(h)
        return jnp.stack(ys, axis=1), h, c

    y0, h0f, c0f = lstm_layer(x, raw["w_ih0"], raw["w_hh0"],
                              raw["b_ih0"], raw["b_hh0"], h0[0], c0[0])
    y1, h1f, c1f = lstm_layer(y0, raw["w_ih1"], raw["w_hh1"],
                              raw["b_ih1"], raw["b_hh1"], h0[1], c0[1])
    logits = y1.reshape(B * T, H) @ raw["fc_w"].T + raw["fc_b"]
    out = jax.nn.log_softmax(logits, axis=1)
    return out, (jnp.stack([h0f, h1f], axis=0), jnp.stack([c0f, c1f], axis=0))


if __name__ == "__main__":
    B, T = 2, 8
    key = jax.random.PRNGKey(0)
    key, kx, kh, kc = jax.random.split(key, 4)

    params, raw_params = init_params(key)
    x = jax.random.normal(kx, (B, T, N_INPUT), jnp.float32)
    h0 = jax.random.normal(kh, (N_LAYERS, B, N_HIDDEN), jnp.float32)
    c0 = jax.random.normal(kc, (N_LAYERS, B, N_HIDDEN), jnp.float32)

    fwd = jax.jit(functools.partial(charnn_forward, params))
    out, (hT, cT) = fwd(x, (h0, c0))
    jax.block_until_ready((out, hT, cT))

    assert out.shape == (B * T, N_INPUT)
    assert hT.shape == (N_LAYERS, B, N_HIDDEN)
    assert cT.shape == (N_LAYERS, B, N_HIDDEN)
    assert bool(jnp.all(jnp.isfinite(out)))
    # log_softmax rows should exp-sum to 1
    assert jnp.allclose(jnp.sum(jnp.exp(out), axis=1), 1.0, atol=1e-4)

    # numerical check vs. f32 reference (bf16 MXU inputs => ~1e-2 deviations)
    ref_out, (ref_h, ref_c) = reference_forward(raw_params, x, h0, c0)
    assert float(jnp.max(jnp.abs(out - ref_out))) < 0.1
    assert float(jnp.max(jnp.abs(hT - ref_h))) < 0.1
    assert float(jnp.max(jnp.abs(cT - ref_c))) < 0.1
    print("KERNEL_OK")
</pallas_src>

<mosaic_0001>
module attributes {stable_mosaic.version = 11 : i64} {
  func.func @_charnn_kernel(%arg0: i32, %arg1: memref<16x128xbf16, #tpu.memory_space<vmem>>, %arg2: memref<256x128xbf16, #tpu.memory_space<vmem>>, %arg3: memref<3x128xf32, #tpu.memory_space<vmem>>, %arg4: memref<8x32xf32, #tpu.memory_space<vmem>>, %arg5: memref<16x128xf32, #tpu.memory_space<vmem>>, %arg6: memref<8x32xf32, #tpu.memory_space<vmem>>, %arg7: memref<16x32xf32, #tpu.memory_space<vmem>>) attributes {dimension_semantics = [#tpu.dimension_semantics<arbitrary>], iteration_bounds = array<i64: 1>, scalar_prefetch = 0 : i64, scratch_operands = 1 : i64, tpu.core_type = #tpu.core_type<tc>, window_params = [{pipeline_mode = #tpu.pipeline_mode<synchronous>, transform_indices = @transform_0, window_bounds = array<i64: 16, 128>}, {pipeline_mode = #tpu.pipeline_mode<synchronous>, transform_indices = @transform_1, window_bounds = array<i64: 256, 128>}, {pipeline_mode = #tpu.pipeline_mode<synchronous>, transform_indices = @transform_2, window_bounds = array<i64: 3, 128>}, {pipeline_mode = #tpu.pipeline_mode<synchronous>, transform_indices = @transform_3, window_bounds = array<i64: 8, 32>}, {pipeline_mode = #tpu.pipeline_mode<synchronous>, transform_indices = @transform_4, window_bounds = array<i64: 16, 128>}, {pipeline_mode = #tpu.pipeline_mode<synchronous>, transform_indices = @transform_5, window_bounds = array<i64: 8, 32>}]} {
    %c128 = arith.constant 128 : index
    %c0 = arith.constant 0 : index
    %0 = vector.load %arg2[%c128, %c0] : memref<256x128xbf16, #tpu.memory_space<vmem>>, vector<32x128xbf16>
    %c160 = arith.constant 160 : index
    %c0_0 = arith.constant 0 : index
    %1 = vector.load %arg2[%c160, %c0_0] : memref<256x128xbf16, #tpu.memory_space<vmem>>, vector<32x128xbf16>
    %c192 = arith.constant 192 : index
    %c0_1 = arith.constant 0 : index
    %2 = vector.load %arg2[%c192, %c0_1] : memref<256x128xbf16, #tpu.memory_space<vmem>>, vector<32x128xbf16>
    %c0_2 = arith.constant 0 : index
    %c0_3 = arith.constant 0 : index
    %3 = vector.load %arg3[%c0_2, %c0_3] : memref<3x128xf32, #tpu.memory_space<vmem>>, vector<1x128xf32>
    %c1 = arith.constant 1 : index
    %c0_4 = arith.constant 0 : index
    %4 = vector.load %arg3[%c1, %c0_4] : memref<3x128xf32, #tpu.memory_space<vmem>>, vector<1x128xf32>
    %5 = vector.shape_cast %4 : vector<1x128xf32> to vector<1x128xf32>
    %6 = vector.broadcast %5 : vector<1x128xf32> to vector<2x128xf32>
    %c0_5 = arith.constant 0 : index
    %c0_6 = arith.constant 0 : index
    %7 = vector.load %arg1[%c0_5, %c0_6] : memref<16x128xbf16, #tpu.memory_space<vmem>>, vector<16x128xbf16>
    %c0_7 = arith.constant 0 : index
    %c0_8 = arith.constant 0 : index
    %8 = vector.load %arg2[%c0_7, %c0_8] : memref<256x128xbf16, #tpu.memory_space<vmem>>, vector<128x128xbf16>
    %cst = arith.constant dense<0.000000e+00> : vector<16x128xf32>
    %9 = tpu.matmul %7, %8, %cst {dimension_numbers = #tpu.dot_dimension_numbers<[1], [0], [0], [1], [0, 0, 1, 1], [], []>} : vector<16x128xbf16>, vector<128x128xbf16>, vector<16x128xf32> -> vector<16x128xf32>
    %10 = vector.broadcast %3 : vector<1x128xf32> to vector<16x128xf32>
    %11 = arith.addf %9, %10 : vector<16x128xf32>
    %c0_9 = arith.constant 0 : index
    %c0_10 = arith.constant 0 : index
    %12 = vector.load %arg4[%c0_9, %c0_10] : memref<8x32xf32, #tpu.memory_space<vmem>>, vector<2x32xf32>
    %c2 = arith.constant 2 : index
    %c0_11 = arith.constant 0 : index
    %13 = vector.load %arg4[%c2, %c0_11] : memref<8x32xf32, #tpu.memory_space<vmem>>, vector<2x32xf32>
    %c4 = arith.constant 4 : index
    %c0_12 = arith.constant 0 : index
    %14 = vector.load %arg4[%c4, %c0_12] : memref<8x32xf32, #tpu.memory_space<vmem>>, vector<2x32xf32>
    %c6 = arith.constant 6 : index
    %c0_13 = arith.constant 0 : index
    %15 = vector.load %arg4[%c6, %c0_13] : memref<8x32xf32, #tpu.memory_space<vmem>>, vector<2x32xf32>
    %16 = vector.extract_strided_slice %11 {offsets = [0, 0], sizes = [2, 128], strides = [1, 1]} : vector<16x128xf32> to vector<2x128xf32>
    %17 = arith.truncf %12 : vector<2x32xf32> to vector<2x32xbf16>
    %cst_14 = arith.constant dense<0.000000e+00> : vector<2x128xf32>
    %18 = tpu.matmul %17, %0, %cst_14 {dimension_numbers = #tpu.dot_dimension_numbers<[1], [0], [0], [1], [0, 0, 1, 1], [], []>} : vector<2x32xbf16>, vector<32x128xbf16>, vector<2x128xf32> -> vector<2x128xf32>
    %19 = arith.addf %16, %18 : vector<2x128xf32>
    %20 = arith.negf %19 : vector<2x128xf32>
    %21 = math.exp %20 : vector<2x128xf32>
    %cst_15 = arith.constant 1.000000e+00 : f32
    %22 = vector.broadcast %cst_15 : f32 to vector<2x128xf32>
    %23 = arith.addf %22, %21 : vector<2x128xf32>
    %24 = arith.divf %22, %23 : vector<2x128xf32>
    %25 = math.tanh %19 : vector<2x128xf32>
    %26 = vector.extract_strided_slice %24 {offsets = [0, 0], sizes = [2, 32], strides = [1, 1]} : vector<2x128xf32> to vector<2x32xf32>
    %27 = vector.extract_strided_slice %24 {offsets = [0, 32], sizes = [2, 32], strides = [1, 1]} : vector<2x128xf32> to vector<2x32xf32>
    %28 = vector.extract_strided_slice %25 {offsets = [0, 64], sizes = [2, 32], strides = [1, 1]} : vector<2x128xf32> to vector<2x32xf32>
    %29 = vector.extract_strided_slice %24 {offsets = [0, 96], sizes = [2, 32], strides = [1, 1]} : vector<2x128xf32> to vector<2x32xf32>
    %30 = arith.mulf %27, %14 : vector<2x32xf32>
    %31 = arith.mulf %26, %28 : vector<2x32xf32>
    %32 = arith.addf %30, %31 : vector<2x32xf32>
    %33 = math.tanh %32 : vector<2x32xf32>
    %34 = arith.mulf %29, %33 : vector<2x32xf32>
    %35 = arith.truncf %34 : vector<2x32xf32> to vector<2x32xbf16>
    %36 = arith.truncf %13 : vector<2x32xf32> to vector<2x32xbf16>
    %37 = vector.extract_strided_slice %11 {offsets = [2, 0], sizes = [2, 128], strides = [1, 1]} : vector<16x128xf32> to vector<2x128xf32>
    %cst_16 = arith.constant dense<0.000000e+00> : vector<2x128xf32>
    %38 = tpu.matmul %35, %0, %cst_16 {dimension_numbers = #tpu.dot_dimension_numbers<[1], [0], [0], [1], [0, 0, 1, 1], [], []>} : vector<2x32xbf16>, vector<32x128xbf16>, vector<2x128xf32> -> vector<2x128xf32>
    %39 = arith.addf %37, %38 : vector<2x128xf32>
    %cst_17 = arith.constant dense<0.000000e+00> : vector<2x128xf32>
    %40 = tpu.matmul %35, %1, %cst_17 {dimension_numbers = #tpu.dot_dimension_numbers<[1], [0], [0], [1], [0, 0, 1, 1], [], []>} : vector<2x32xbf16>, vector<32x128xbf16>, vector<2x128xf32> -> vector<2x128xf32>
    %41 = arith.addf %40, %6 : vector<2x128xf32>
    %cst_18 = arith.constant dense<0.000000e+00> : vector<2x128xf32>
    %42 = tpu.matmul %36, %2, %cst_18 {dimension_numbers = #tpu.dot_dimension_numbers<[1], [0], [0], [1], [0, 0, 1, 1], [], []>} : vector<2x32xbf16>, vector<32x128xbf16>, vector<2x128xf32> -> vector<2x128xf32>
    %43 = arith.addf %41, %42 : vector<2x128xf32>
    %44 = arith.negf %43 : vector<2x128xf32>
    %45 = math.exp %44 : vector<2x128xf32>
    %cst_19 = arith.constant 1.000000e+00 : f32
    %46 = vector.broadcast %cst_19 : f32 to vector<2x128xf32>
    %47 = arith.addf %46, %45 : vector<2x128xf32>
    %48 = arith.divf %46, %47 : vector<2x128xf32>
    %49 = math.tanh %43 : vector<2x128xf32>
    %50 = vector.extract_strided_slice %48 {offsets = [0, 0], sizes = [2, 32], strides = [1, 1]} : vector<2x128xf32> to vector<2x32xf32>
    %51 = vector.extract_strided_slice %48 {offsets = [0, 32], sizes = [2, 32], strides = [1, 1]} : vector<2x128xf32> to vector<2x32xf32>
    %52 = vector.extract_strided_slice %49 {offsets = [0, 64], sizes = [2, 32], strides = [1, 1]} : vector<2x128xf32> to vector<2x32xf32>
    %53 = vector.extract_strided_slice %48 {offsets = [0, 96], sizes = [2, 32], strides = [1, 1]} : vector<2x128xf32> to vector<2x32xf32>
    %54 = arith.mulf %51, %15 : vector<2x32xf32>
    %55 = arith.mulf %50, %52 : vector<2x32xf32>
    %56 = arith.addf %54, %55 : vector<2x32xf32>
    %57 = math.tanh %56 : vector<2x32xf32>
    %58 = arith.mulf %53, %57 : vector<2x32xf32>
    %c0_20 = arith.constant 0 : index
    %c0_21 = arith.constant 0 : index
    %59 = vector.load %arg7[%c0_20, %c0_21] : memref<16x32xf32, #tpu.memory_space<vmem>>, vector<2x32xf32>
    tpu.vector_store %arg7[%c0_20, %c0_21], %58 {strides = array<i32>} : memref<16x32xf32, #tpu.memory_space<vmem>>, vector<2x32xf32>,
    %60 = arith.negf %39 : vector<2x128xf32>
    %61 = math.exp %60 : vector<2x128xf32>
    %cst_22 = arith.constant 1.000000e+00 : f32
    %62 = vector.broadcast %cst_22 : f32 to vector<2x128xf32>
    %63 = arith.addf %62, %61 : vector<2x128xf32>
    %64 = arith.divf %62, %63 : vector<2x128xf32>
    %65 = math.tanh %39 : vector<2x128xf32>
    %66 = vector.extract_strided_slice %64 {offsets = [0, 0], sizes = [2, 32], strides = [1, 1]} : vector<2x128xf32> to vector<2x32xf32>
    %67 = vector.extract_strided_slice %64 {offsets = [0, 32], sizes = [2, 32], strides = [1, 1]} : vector<2x128xf32> to vector<2x32xf32>
    %68 = vector.extract_strided_slice %65 {offsets = [0, 64], sizes = [2, 32], strides = [1, 1]} : vector<2x128xf32> to vector<2x32xf32>
    %69 = vector.extract_strided_slice %64 {offsets = [0, 96], sizes = [2, 32], strides = [1, 1]} : vector<2x128xf32> to vector<2x32xf32>
    %70 = arith.mulf %67, %32 : vector<2x32xf32>
    %71 = arith.mulf %66, %68 : vector<2x32xf32>
    %72 = arith.addf %70, %71 : vector<2x32xf32>
    %73 = math.tanh %72 : vector<2x32xf32>
    %74 = arith.mulf %69, %73 : vector<2x32xf32>
    %75 = arith.truncf %74 : vector<2x32xf32> to vector<2x32xbf16>
    %76 = arith.truncf %58 : vector<2x32xf32> to vector<2x32xbf16>
    %77 = vector.extract_strided_slice %11 {offsets = [4, 0], sizes = [2, 128], strides = [1, 1]} : vector<16x128xf32> to vector<2x128xf32>
    %cst_23 = arith.constant dense<0.000000e+00> : vector<2x128xf32>
    %78 = tpu.matmul %75, %0, %cst_23 {dimension_numbers = #tpu.dot_dimension_numbers<[1], [0], [0], [1], [0, 0, 1, 1], [], []>} : vector<2x32xbf16>, vector<32x128xbf16>, vector<2x128xf32> -> vector<2x128xf32>
    %79 = arith.addf %77, %78 : vector<2x128xf32>
    %cst_24 = arith.constant dense<0.000000e+00> : vector<2x128xf32>
    %80 = tpu.matmul %75, %1, %cst_24 {dimension_numbers = #tpu.dot_dimension_numbers<[1], [0], [0], [1], [0, 0, 1, 1], [], []>} : vector<2x32xbf16>, vector<32x128xbf16>, vector<2x128xf32> -> vector<2x128xf32>
    %81 = arith.addf %80, %6 : vector<2x128xf32>
    %cst_25 = arith.constant dense<0.000000e+00> : vector<2x128xf32>
    %82 = tpu.matmul %76, %2, %cst_25 {dimension_numbers = #tpu.dot_dimension_numbers<[1], [0], [0], [1], [0, 0, 1, 1], [], []>} : vector<2x32xbf16>, vector<32x128xbf16>, vector<2x128xf32> -> vector<2x128xf32>
    %83 = arith.addf %81, %82 : vector<2x128xf32>
    %84 = arith.negf %83 : vector<2x128xf32>
    %85 = math.exp %84 : vector<2x128xf32>
    %cst_26 = arith.constant 1.000000e+00 : f32
    %86 = vector.broadcast %cst_26 : f32 to vector<2x128xf32>
    %87 = arith.addf %86, %85 : vector<2x128xf32>
    %88 = arith.divf %86, %87 : vector<2x128xf32>
    %89 = math.tanh %83 : vector<2x128xf32>
    %90 = vector.extract_strided_slice %88 {offsets = [0, 0], sizes = [2, 32], strides = [1, 1]} : vector<2x128xf32> to vector<2x32xf32>
    %91 = vector.extract_strided_slice %88 {offsets = [0, 32], sizes = [2, 32], strides = [1, 1]} : vector<2x128xf32> to vector<2x32xf32>
    %92 = vector.extract_strided_slice %89 {offsets = [0, 64], sizes = [2, 32], strides = [1, 1]} : vector<2x128xf32> to vector<2x32xf32>
    %93 = vector.extract_strided_slice %88 {offsets = [0, 96], sizes = [2, 32], strides = [1, 1]} : vector<2x128xf32> to vector<2x32xf32>
    %94 = arith.mulf %91, %56 : vector<2x32xf32>
    %95 = arith.mulf %90, %92 : vector<2x32xf32>
    %96 = arith.addf %94, %95 : vector<2x32xf32>
    %97 = math.tanh %96 : vector<2x32xf32>
    %98 = arith.mulf %93, %97 : vector<2x32xf32>
    %c2_27 = arith.constant 2 : index
    %c0_28 = arith.constant 0 : index
    %99 = vector.load %arg7[%c2_27, %c0_28] : memref<16x32xf32, #tpu.memory_space<vmem>>, vector<2x32xf32>
    tpu.vector_store %arg7[%c2_27, %c0_28], %98 {strides = array<i32>} : memref<16x32xf32, #tpu.memory_space<vmem>>, vector<2x32xf32>,
    %100 = arith.negf %79 : vector<2x128xf32>
    %101 = math.exp %100 : vector<2x128xf32>
    %cst_29 = arith.constant 1.000000e+00 : f32
    %102 = vector.broadcast %cst_29 : f32 to vector<2x128xf32>
    %103 = arith.addf %102, %101 : vector<2x128xf32>
    %104 = arith.divf %102, %103 : vector<2x128xf32>
    %105 = math.tanh %79 : vector<2x128xf32>
    %106 = vector.extract_strided_slice %104 {offsets = [0, 0], sizes = [2, 32], strides = [1, 1]} : vector<2x128xf32> to vector<2x32xf32>
    %107 = vector.extract_strided_slice %104 {offsets = [0, 32], sizes = [2, 32], strides = [1, 1]} : vector<2x128xf32> to vector<2x32xf32>
    %108 = vector.extract_strided_slice %105 {offsets = [0, 64], sizes = [2, 32], strides = [1, 1]} : vector<2x128xf32> to vector<2x32xf32>
    %109 = vector.extract_strided_slice %104 {offsets = [0, 96], sizes = [2, 32], strides = [1, 1]} : vector<2x128xf32> to vector<2x32xf32>
    %110 = arith.mulf %107, %72 : vector<2x32xf32>
    %111 = arith.mulf %106, %108 : vector<2x32xf32>
    %112 = arith.addf %110, %111 : vector<2x32xf32>
    %113 = math.tanh %112 : vector<2x32xf32>
    %114 = arith.mulf %109, %113 : vector<2x32xf32>
    %115 = arith.truncf %114 : vector<2x32xf32> to vector<2x32xbf16>
    %116 = arith.truncf %98 : vector<2x32xf32> to vector<2x32xbf16>
    %117 = vector.extract_strided_slice %11 {offsets = [6, 0], sizes = [2, 128], strides = [1, 1]} : vector<16x128xf32> to vector<2x128xf32>
    %cst_30 = arith.constant dense<0.000000e+00> : vector<2x128xf32>
    %118 = tpu.matmul %115, %0, %cst_30 {dimension_numbers = #tpu.dot_dimension_numbers<[1], [0], [0], [1], [0, 0, 1, 1], [], []>} : vector<2x32xbf16>, vector<32x128xbf16>, vector<2x128xf32> -> vector<2x128xf32>
    %119 = arith.addf %117, %118 : vector<2x128xf32>
    %cst_31 = arith.constant dense<0.000000e+00> : vector<2x128xf32>
    %120 = tpu.matmul %115, %1, %cst_31 {dimension_numbers = #tpu.dot_dimension_numbers<[1], [0], [0], [1], [0, 0, 1, 1], [], []>} : vector<2x32xbf16>, vector<32x128xbf16>, vector<2x128xf32> -> vector<2x128xf32>
    %121 = arith.addf %120, %6 : vector<2x128xf32>
    %cst_32 = arith.constant dense<0.000000e+00> : vector<2x128xf32>
    %122 = tpu.matmul %116, %2, %cst_32 {dimension_numbers = #tpu.dot_dimension_numbers<[1], [0], [0], [1], [0, 0, 1, 1], [], []>} : vector<2x32xbf16>, vector<32x128xbf16>, vector<2x128xf32> -> vector<2x128xf32>
    %123 = arith.addf %121, %122 : vector<2x128xf32>
    %124 = arith.negf %123 : vector<2x128xf32>
    %125 = math.exp %124 : vector<2x128xf32>
    %cst_33 = arith.constant 1.000000e+00 : f32
    %126 = vector.broadcast %cst_33 : f32 to vector<2x128xf32>
    %127 = arith.addf %126, %125 : vector<2x128xf32>
    %128 = arith.divf %126, %127 : vector<2x128xf32>
    %129 = math.tanh %123 : vector<2x128xf32>
    %130 = vector.extract_strided_slice %128 {offsets = [0, 0], sizes = [2, 32], strides = [1, 1]} : vector<2x128xf32> to vector<2x32xf32>
    %131 = vector.extract_strided_slice %128 {offsets = [0, 32], sizes = [2, 32], strides = [1, 1]} : vector<2x128xf32> to vector<2x32xf32>
    %132 = vector.extract_strided_slice %129 {offsets = [0, 64], sizes = [2, 32], strides = [1, 1]} : vector<2x128xf32> to vector<2x32xf32>
    %133 = vector.extract_strided_slice %128 {offsets = [0, 96], sizes = [2, 32], strides = [1, 1]} : vector<2x128xf32> to vector<2x32xf32>
    %134 = arith.mulf %131, %96 : vector<2x32xf32>
    %135 = arith.mulf %130, %132 : vector<2x32xf32>
    %136 = arith.addf %134, %135 : vector<2x32xf32>
    %137 = math.tanh %136 : vector<2x32xf32>
    %138 = arith.mulf %133, %137 : vector<2x32xf32>
    %c4_34 = arith.constant 4 : index
    %c0_35 = arith.constant 0 : index
    %139 = vector.load %arg7[%c4_34, %c0_35] : memref<16x32xf32, #tpu.memory_space<vmem>>, vector<2x32xf32>
    tpu.vector_store %arg7[%c4_34, %c0_35], %138 {strides = array<i32>} : memref<16x32xf32, #tpu.memory_space<vmem>>, vector<2x32xf32>,
    %140 = arith.negf %119 : vector<2x128xf32>
    %141 = math.exp %140 : vector<2x128xf32>
    %cst_36 = arith.constant 1.000000e+00 : f32
    %142 = vector.broadcast %cst_36 : f32 to vector<2x128xf32>
    %143 = arith.addf %142, %141 : vector<2x128xf32>
    %144 = arith.divf %142, %143 : vector<2x128xf32>
    %145 = math.tanh %119 : vector<2x128xf32>
    %146 = vector.extract_strided_slice %144 {offsets = [0, 0], sizes = [2, 32], strides = [1, 1]} : vector<2x128xf32> to vector<2x32xf32>
    %147 = vector.extract_strided_slice %144 {offsets = [0, 32], sizes = [2, 32], strides = [1, 1]} : vector<2x128xf32> to vector<2x32xf32>
    %148 = vector.extract_strided_slice %145 {offsets = [0, 64], sizes = [2, 32], strides = [1, 1]} : vector<2x128xf32> to vector<2x32xf32>
    %149 = vector.extract_strided_slice %144 {offsets = [0, 96], sizes = [2, 32], strides = [1, 1]} : vector<2x128xf32> to vector<2x32xf32>
    %150 = arith.mulf %147, %112 : vector<2x32xf32>
    %151 = arith.mulf %146, %148 : vector<2x32xf32>
    %152 = arith.addf %150, %151 : vector<2x32xf32>
    %153 = math.tanh %152 : vector<2x32xf32>
    %154 = arith.mulf %149, %153 : vector<2x32xf32>
    %155 = arith.truncf %154 : vector<2x32xf32> to vector<2x32xbf16>
    %156 = arith.truncf %138 : vector<2x32xf32> to vector<2x32xbf16>
    %157 = vector.extract_strided_slice %11 {offsets = [8, 0], sizes = [2, 128], strides = [1, 1]} : vector<16x128xf32> to vector<2x128xf32>
    %cst_37 = arith.constant dense<0.000000e+00> : vector<2x128xf32>
    %158 = tpu.matmul %155, %0, %cst_37 {dimension_numbers = #tpu.dot_dimension_numbers<[1], [0], [0], [1], [0, 0, 1, 1], [], []>} : vector<2x32xbf16>, vector<32x128xbf16>, vector<2x128xf32> -> vector<2x128xf32>
    %159 = arith.addf %157, %158 : vector<2x128xf32>
    %cst_38 = arith.constant dense<0.000000e+00> : vector<2x128xf32>
    %160 = tpu.matmul %155, %1, %cst_38 {dimension_numbers = #tpu.dot_dimension_numbers<[1], [0], [0], [1], [0, 0, 1, 1], [], []>} : vector<2x32xbf16>, vector<32x128xbf16>, vector<2x128xf32> -> vector<2x128xf32>
    %161 = arith.addf %160, %6 : vector<2x128xf32>
    %cst_39 = arith.constant dense<0.000000e+00> : vector<2x128xf32>
    %162 = tpu.matmul %156, %2, %cst_39 {dimension_numbers = #tpu.dot_dimension_numbers<[1], [0], [0], [1], [0, 0, 1, 1], [], []>} : vector<2x32xbf16>, vector<32x128xbf16>, vector<2x128xf32> -> vector<2x128xf32>
    %163 = arith.addf %161, %162 : vector<2x128xf32>
    %164 = arith.negf %163 : vector<2x128xf32>
    %165 = math.exp %164 : vector<2x128xf32>
    %cst_40 = arith.constant 1.000000e+00 : f32
    %166 = vector.broadcast %cst_40 : f32 to vector<2x128xf32>
    %167 = arith.addf %166, %165 : vector<2x128xf32>
    %168 = arith.divf %166, %167 : vector<2x128xf32>
    %169 = math.tanh %163 : vector<2x128xf32>
    %170 = vector.extract_strided_slice %168 {offsets = [0, 0], sizes = [2, 32], strides = [1, 1]} : vector<2x128xf32> to vector<2x32xf32>
    %171 = vector.extract_strided_slice %168 {offsets = [0, 32], sizes = [2, 32], strides = [1, 1]} : vector<2x128xf32> to vector<2x32xf32>
    %172 = vector.extract_strided_slice %169 {offsets = [0, 64], sizes = [2, 32], strides = [1, 1]} : vector<2x128xf32> to vector<2x32xf32>
    %173 = vector.extract_strided_slice %168 {offsets = [0, 96], sizes = [2, 32], strides = [1, 1]} : vector<2x128xf32> to vector<2x32xf32>
    %174 = arith.mulf %171, %136 : vector<2x32xf32>
    %175 = arith.mulf %170, %172 : vector<2x32xf32>
    %176 = arith.addf %174, %175 : vector<2x32xf32>
    %177 = math.tanh %176 : vector<2x32xf32>
    %178 = arith.mulf %173, %177 : vector<2x32xf32>
    %c6_41 = arith.constant 6 : index
    %c0_42 = arith.constant 0 : index
    %179 = vector.load %arg7[%c6_41, %c0_42] : memref<16x32xf32, #tpu.memory_space<vmem>>, vector<2x32xf32>
    tpu.vector_store %arg7[%c6_41, %c0_42], %178 {strides = array<i32>} : memref<16x32xf32, #tpu.memory_space<vmem>>, vector<2x32xf32>,
    %180 = arith.negf %159 : vector<2x128xf32>
    %181 = math.exp %180 : vector<2x128xf32>
    %cst_43 = arith.constant 1.000000e+00 : f32
    %182 = vector.broadcast %cst_43 : f32 to vector<2x128xf32>
    %183 = arith.addf %182, %181 : vector<2x128xf32>
    %184 = arith.divf %182, %183 : vector<2x128xf32>
    %185 = math.tanh %159 : vector<2x128xf32>
    %186 = vector.extract_strided_slice %184 {offsets = [0, 0], sizes = [2, 32], strides = [1, 1]} : vector<2x128xf32> to vector<2x32xf32>
    %187 = vector.extract_strided_slice %184 {offsets = [0, 32], sizes = [2, 32], strides = [1, 1]} : vector<2x128xf32> to vector<2x32xf32>
    %188 = vector.extract_strided_slice %185 {offsets = [0, 64], sizes = [2, 32], strides = [1, 1]} : vector<2x128xf32> to vector<2x32xf32>
    %189 = vector.extract_strided_slice %184 {offsets = [0, 96], sizes = [2, 32], strides = [1, 1]} : vector<2x128xf32> to vector<2x32xf32>
    %190 = arith.mulf %187, %152 : vector<2x32xf32>
    %191 = arith.mulf %186, %188 : vector<2x32xf32>
    %192 = arith.addf %190, %191 : vector<2x32xf32>
    %193 = math.tanh %192 : vector<2x32xf32>
    %194 = arith.mulf %189, %193 : vector<2x32xf32>
    %195 = arith.truncf %194 : vector<2x32xf32> to vector<2x32xbf16>
    %196 = arith.truncf %178 : vector<2x32xf32> to vector<2x32xbf16>
    %197 = vector.extract_strided_slice %11 {offsets = [10, 0], sizes = [2, 128], strides = [1, 1]} : vector<16x128xf32> to vector<2x128xf32>
    %cst_44 = arith.constant dense<0.000000e+00> : vector<2x128xf32>
    %198 = tpu.matmul %195, %0, %cst_44 {dimension_numbers = #tpu.dot_dimension_numbers<[1], [0], [0], [1], [0, 0, 1, 1], [], []>} : vector<2x32xbf16>, vector<32x128xbf16>, vector<2x128xf32> -> vector<2x128xf32>
    %199 = arith.addf %197, %198 : vector<2x128xf32>
    %cst_45 = arith.constant dense<0.000000e+00> : vector<2x128xf32>
    %200 = tpu.matmul %195, %1, %cst_45 {dimension_numbers = #tpu.dot_dimension_numbers<[1], [0], [0], [1], [0, 0, 1, 1], [], []>} : vector<2x32xbf16>, vector<32x128xbf16>, vector<2x128xf32> -> vector<2x128xf32>
    %201 = arith.addf %200, %6 : vector<2x128xf32>
    %cst_46 = arith.constant dense<0.000000e+00> : vector<2x128xf32>
    %202 = tpu.matmul %196, %2, %cst_46 {dimension_numbers = #tpu.dot_dimension_numbers<[1], [0], [0], [1], [0, 0, 1, 1], [], []>} : vector<2x32xbf16>, vector<32x128xbf16>, vector<2x128xf32> -> vector<2x128xf32>
    %203 = arith.addf %201, %202 : vector<2x128xf32>
    %204 = arith.negf %203 : vector<2x128xf32>
    %205 = math.exp %204 : vector<2x128xf32>
    %cst_47 = arith.constant 1.000000e+00 : f32
    %206 = vector.broadcast %cst_47 : f32 to vector<2x128xf32>
    %207 = arith.addf %206, %205 : vector<2x128xf32>
    %208 = arith.divf %206, %207 : vector<2x128xf32>
    %209 = math.tanh %203 : vector<2x128xf32>
    %210 = vector.extract_strided_slice %208 {offsets = [0, 0], sizes = [2, 32], strides = [1, 1]} : vector<2x128xf32> to vector<2x32xf32>
    %211 = vector.extract_strided_slice %208 {offsets = [0, 32], sizes = [2, 32], strides = [1, 1]} : vector<2x128xf32> to vector<2x32xf32>
    %212 = vector.extract_strided_slice %209 {offsets = [0, 64], sizes = [2, 32], strides = [1, 1]} : vector<2x128xf32> to vector<2x32xf32>
    %213 = vector.extract_strided_slice %208 {offsets = [0, 96], sizes = [2, 32], strides = [1, 1]} : vector<2x128xf32> to vector<2x32xf32>
    %214 = arith.mulf %211, %176 : vector<2x32xf32>
    %215 = arith.mulf %210, %212 : vector<2x32xf32>
    %216 = arith.addf %214, %215 : vector<2x32xf32>
    %217 = math.tanh %216 : vector<2x32xf32>
    %218 = arith.mulf %213, %217 : vector<2x32xf32>
    %c8 = arith.constant 8 : index
    %c0_48 = arith.constant 0 : index
    %219 = vector.load %arg7[%c8, %c0_48] : memref<16x32xf32, #tpu.memory_space<vmem>>, vector<2x32xf32>
    tpu.vector_store %arg7[%c8, %c0_48], %218 {strides = array<i32>} : memref<16x32xf32, #tpu.memory_space<vmem>>, vector<2x32xf32>,
    %220 = arith.negf %199 : vector<2x128xf32>
    %221 = math.exp %220 : vector<2x128xf32>
    %cst_49 = arith.constant 1.000000e+00 : f32
    %222 = vector.broadcast %cst_49 : f32 to vector<2x128xf32>
    %223 = arith.addf %222, %221 : vector<2x128xf32>
    %224 = arith.divf %222, %223 : vector<2x128xf32>
    %225 = math.tanh %199 : vector<2x128xf32>
    %226 = vector.extract_strided_slice %224 {offsets = [0, 0], sizes = [2, 32], strides = [1, 1]} : vector<2x128xf32> to vector<2x32xf32>
    %227 = vector.extract_strided_slice %224 {offsets = [0, 32], sizes = [2, 32], strides = [1, 1]} : vector<2x128xf32> to vector<2x32xf32>
    %228 = vector.extract_strided_slice %225 {offsets = [0, 64], sizes = [2, 32], strides = [1, 1]} : vector<2x128xf32> to vector<2x32xf32>
    %229 = vector.extract_strided_slice %224 {offsets = [0, 96], sizes = [2, 32], strides = [1, 1]} : vector<2x128xf32> to vector<2x32xf32>
    %230 = arith.mulf %227, %192 : vector<2x32xf32>
    %231 = arith.mulf %226, %228 : vector<2x32xf32>
    %232 = arith.addf %230, %231 : vector<2x32xf32>
    %233 = math.tanh %232 : vector<2x32xf32>
    %234 = arith.mulf %229, %233 : vector<2x32xf32>
    %235 = arith.truncf %234 : vector<2x32xf32> to vector<2x32xbf16>
    %236 = arith.truncf %218 : vector<2x32xf32> to vector<2x32xbf16>
    %237 = vector.extract_strided_slice %11 {offsets = [12, 0], sizes = [2, 128], strides = [1, 1]} : vector<16x128xf32> to vector<2x128xf32>
    %cst_50 = arith.constant dense<0.000000e+00> : vector<2x128xf32>
    %238 = tpu.matmul %235, %0, %cst_50 {dimension_numbers = #tpu.dot_dimension_numbers<[1], [0], [0], [1], [0, 0, 1, 1], [], []>} : vector<2x32xbf16>, vector<32x128xbf16>, vector<2x128xf32> -> vector<2x128xf32>
    %239 = arith.addf %237, %238 : vector<2x128xf32>
    %cst_51 = arith.constant dense<0.000000e+00> : vector<2x128xf32>
    %240 = tpu.matmul %235, %1, %cst_51 {dimension_numbers = #tpu.dot_dimension_numbers<[1], [0], [0], [1], [0, 0, 1, 1], [], []>} : vector<2x32xbf16>, vector<32x128xbf16>, vector<2x128xf32> -> vector<2x128xf32>
    %241 = arith.addf %240, %6 : vector<2x128xf32>
    %cst_52 = arith.constant dense<0.000000e+00> : vector<2x128xf32>
    %242 = tpu.matmul %236, %2, %cst_52 {dimension_numbers = #tpu.dot_dimension_numbers<[1], [0], [0], [1], [0, 0, 1, 1], [], []>} : vector<2x32xbf16>, vector<32x128xbf16>, vector<2x128xf32> -> vector<2x128xf32>
    %243 = arith.addf %241, %242 : vector<2x128xf32>
    %244 = arith.negf %243 : vector<2x128xf32>
    %245 = math.exp %244 : vector<2x128xf32>
    %cst_53 = arith.constant 1.000000e+00 : f32
    %246 = vector.broadcast %cst_53 : f32 to vector<2x128xf32>
    %247 = arith.addf %246, %245 : vector<2x128xf32>
    %248 = arith.divf %246, %247 : vector<2x128xf32>
    %249 = math.tanh %243 : vector<2x128xf32>
    %250 = vector.extract_strided_slice %248 {offsets = [0, 0], sizes = [2, 32], strides = [1, 1]} : vector<2x128xf32> to vector<2x32xf32>
    %251 = vector.extract_strided_slice %248 {offsets = [0, 32], sizes = [2, 32], strides = [1, 1]} : vector<2x128xf32> to vector<2x32xf32>
    %252 = vector.extract_strided_slice %249 {offsets = [0, 64], sizes = [2, 32], strides = [1, 1]} : vector<2x128xf32> to vector<2x32xf32>
    %253 = vector.extract_strided_slice %248 {offsets = [0, 96], sizes = [2, 32], strides = [1, 1]} : vector<2x128xf32> to vector<2x32xf32>
    %254 = arith.mulf %251, %216 : vector<2x32xf32>
    %255 = arith.mulf %250, %252 : vector<2x32xf32>
    %256 = arith.addf %254, %255 : vector<2x32xf32>
    %257 = math.tanh %256 : vector<2x32xf32>
    %258 = arith.mulf %253, %257 : vector<2x32xf32>
    %c10 = arith.constant 10 : index
    %c0_54 = arith.constant 0 : index
    %259 = vector.load %arg7[%c10, %c0_54] : memref<16x32xf32, #tpu.memory_space<vmem>>, vector<2x32xf32>
    tpu.vector_store %arg7[%c10, %c0_54], %258 {strides = array<i32>} : memref<16x32xf32, #tpu.memory_space<vmem>>, vector<2x32xf32>,
    %260 = arith.negf %239 : vector<2x128xf32>
    %261 = math.exp %260 : vector<2x128xf32>
    %cst_55 = arith.constant 1.000000e+00 : f32
    %262 = vector.broadcast %cst_55 : f32 to vector<2x128xf32>
    %263 = arith.addf %262, %261 : vector<2x128xf32>
    %264 = arith.divf %262, %263 : vector<2x128xf32>
    %265 = math.tanh %239 : vector<2x128xf32>
    %266 = vector.extract_strided_slice %264 {offsets = [0, 0], sizes = [2, 32], strides = [1, 1]} : vector<2x128xf32> to vector<2x32xf32>
    %267 = vector.extract_strided_slice %264 {offsets = [0, 32], sizes = [2, 32], strides = [1, 1]} : vector<2x128xf32> to vector<2x32xf32>
    %268 = vector.extract_strided_slice %265 {offsets = [0, 64], sizes = [2, 32], strides = [1, 1]} : vector<2x128xf32> to vector<2x32xf32>
    %269 = vector.extract_strided_slice %264 {offsets = [0, 96], sizes = [2, 32], strides = [1, 1]} : vector<2x128xf32> to vector<2x32xf32>
    %270 = arith.mulf %267, %232 : vector<2x32xf32>
    %271 = arith.mulf %266, %268 : vector<2x32xf32>
    %272 = arith.addf %270, %271 : vector<2x32xf32>
    %273 = math.tanh %272 : vector<2x32xf32>
    %274 = arith.mulf %269, %273 : vector<2x32xf32>
    %275 = arith.truncf %274 : vector<2x32xf32> to vector<2x32xbf16>
    %276 = arith.truncf %258 : vector<2x32xf32> to vector<2x32xbf16>
    %277 = vector.extract_strided_slice %11 {offsets = [14, 0], sizes = [2, 128], strides = [1, 1]} : vector<16x128xf32> to vector<2x128xf32>
    %cst_56 = arith.constant dense<0.000000e+00> : vector<2x128xf32>
    %278 = tpu.matmul %275, %0, %cst_56 {dimension_numbers = #tpu.dot_dimension_numbers<[1], [0], [0], [1], [0, 0, 1, 1], [], []>} : vector<2x32xbf16>, vector<32x128xbf16>, vector<2x128xf32> -> vector<2x128xf32>
    %279 = arith.addf %277, %278 : vector<2x128xf32>
    %cst_57 = arith.constant dense<0.000000e+00> : vector<2x128xf32>
    %280 = tpu.matmul %275, %1, %cst_57 {dimension_numbers = #tpu.dot_dimension_numbers<[1], [0], [0], [1], [0, 0, 1, 1], [], []>} : vector<2x32xbf16>, vector<32x128xbf16>, vector<2x128xf32> -> vector<2x128xf32>
    %281 = arith.addf %280, %6 : vector<2x128xf32>
    %cst_58 = arith.constant dense<0.000000e+00> : vector<2x128xf32>
    %282 = tpu.matmul %276, %2, %cst_58 {dimension_numbers = #tpu.dot_dimension_numbers<[1], [0], [0], [1], [0, 0, 1, 1], [], []>} : vector<2x32xbf16>, vector<32x128xbf16>, vector<2x128xf32> -> vector<2x128xf32>
    %283 = arith.addf %281, %282 : vector<2x128xf32>
    %284 = arith.negf %283 : vector<2x128xf32>
    %285 = math.exp %284 : vector<2x128xf32>
    %cst_59 = arith.constant 1.000000e+00 : f32
    %286 = vector.broadcast %cst_59 : f32 to vector<2x128xf32>
    %287 = arith.addf %286, %285 : vector<2x128xf32>
    %288 = arith.divf %286, %287 : vector<2x128xf32>
    %289 = math.tanh %283 : vector<2x128xf32>
    %290 = vector.extract_strided_slice %288 {offsets = [0, 0], sizes = [2, 32], strides = [1, 1]} : vector<2x128xf32> to vector<2x32xf32>
    %291 = vector.extract_strided_slice %288 {offsets = [0, 32], sizes = [2, 32], strides = [1, 1]} : vector<2x128xf32> to vector<2x32xf32>
    %292 = vector.extract_strided_slice %289 {offsets = [0, 64], sizes = [2, 32], strides = [1, 1]} : vector<2x128xf32> to vector<2x32xf32>
    %293 = vector.extract_strided_slice %288 {offsets = [0, 96], sizes = [2, 32], strides = [1, 1]} : vector<2x128xf32> to vector<2x32xf32>
    %294 = arith.mulf %291, %256 : vector<2x32xf32>
    %295 = arith.mulf %290, %292 : vector<2x32xf32>
    %296 = arith.addf %294, %295 : vector<2x32xf32>
    %297 = math.tanh %296 : vector<2x32xf32>
    %298 = arith.mulf %293, %297 : vector<2x32xf32>
    %c12 = arith.constant 12 : index
    %c0_60 = arith.constant 0 : index
    %299 = vector.load %arg7[%c12, %c0_60] : memref<16x32xf32, #tpu.memory_space<vmem>>, vector<2x32xf32>
    tpu.vector_store %arg7[%c12, %c0_60], %298 {strides = array<i32>} : memref<16x32xf32, #tpu.memory_space<vmem>>, vector<2x32xf32>,
    %300 = arith.negf %279 : vector<2x128xf32>
    %301 = math.exp %300 : vector<2x128xf32>
    %cst_61 = arith.constant 1.000000e+00 : f32
    %302 = vector.broadcast %cst_61 : f32 to vector<2x128xf32>
    %303 = arith.addf %302, %301 : vector<2x128xf32>
    %304 = arith.divf %302, %303 : vector<2x128xf32>
    %305 = math.tanh %279 : vector<2x128xf32>
    %306 = vector.extract_strided_slice %304 {offsets = [0, 0], sizes = [2, 32], strides = [1, 1]} : vector<2x128xf32> to vector<2x32xf32>
    %307 = vector.extract_strided_slice %304 {offsets = [0, 32], sizes = [2, 32], strides = [1, 1]} : vector<2x128xf32> to vector<2x32xf32>
    %308 = vector.extract_strided_slice %305 {offsets = [0, 64], sizes = [2, 32], strides = [1, 1]} : vector<2x128xf32> to vector<2x32xf32>
    %309 = vector.extract_strided_slice %304 {offsets = [0, 96], sizes = [2, 32], strides = [1, 1]} : vector<2x128xf32> to vector<2x32xf32>
    %310 = arith.mulf %307, %272 : vector<2x32xf32>
    %311 = arith.mulf %306, %308 : vector<2x32xf32>
    %312 = arith.addf %310, %311 : vector<2x32xf32>
    %313 = math.tanh %312 : vector<2x32xf32>
    %314 = arith.mulf %309, %313 : vector<2x32xf32>
    %315 = arith.truncf %314 : vector<2x32xf32> to vector<2x32xbf16>
    %cst_62 = arith.constant dense<0.000000e+00> : vector<2x128xf32>
    %316 = tpu.matmul %315, %1, %cst_62 {dimension_numbers = #tpu.dot_dimension_numbers<[1], [0], [0], [1], [0, 0, 1, 1], [], []>} : vector<2x32xbf16>, vector<32x128xbf16>, vector<2x128xf32> -> vector<2x128xf32>
    %317 = arith.addf %316, %6 : vector<2x128xf32>
    %318 = arith.truncf %298 : vector<2x32xf32> to vector<2x32xbf16>
    %cst_63 = arith.constant dense<0.000000e+00> : vector<2x128xf32>
    %319 = tpu.matmul %318, %2, %cst_63 {dimension_numbers = #tpu.dot_dimension_numbers<[1], [0], [0], [1], [0, 0, 1, 1], [], []>} : vector<2x32xbf16>, vector<32x128xbf16>, vector<2x128xf32> -> vector<2x128xf32>
    %320 = arith.addf %317, %319 : vector<2x128xf32>
    %321 = arith.negf %320 : vector<2x128xf32>
    %322 = math.exp %321 : vector<2x128xf32>
    %cst_64 = arith.constant 1.000000e+00 : f32
    %323 = vector.broadcast %cst_64 : f32 to vector<2x128xf32>
    %324 = arith.addf %323, %322 : vector<2x128xf32>
    %325 = arith.divf %323, %324 : vector<2x128xf32>
    %326 = math.tanh %320 : vector<2x128xf32>
    %327 = vector.extract_strided_slice %325 {offsets = [0, 0], sizes = [2, 32], strides = [1, 1]} : vector<2x128xf32> to vector<2x32xf32>
    %328 = vector.extract_strided_slice %325 {offsets = [0, 32], sizes = [2, 32], strides = [1, 1]} : vector<2x128xf32> to vector<2x32xf32>
    %329 = vector.extract_strided_slice %326 {offsets = [0, 64], sizes = [2, 32], strides = [1, 1]} : vector<2x128xf32> to vector<2x32xf32>
    %330 = vector.extract_strided_slice %325 {offsets = [0, 96], sizes = [2, 32], strides = [1, 1]} : vector<2x128xf32> to vector<2x32xf32>
    %331 = arith.mulf %328, %296 : vector<2x32xf32>
    %332 = arith.mulf %327, %329 : vector<2x32xf32>
    %333 = arith.addf %331, %332 : vector<2x32xf32>
    %334 = math.tanh %333 : vector<2x32xf32>
    %335 = arith.mulf %330, %334 : vector<2x32xf32>
    %c14 = arith.constant 14 : index
    %c0_65 = arith.constant 0 : index
    %336 = vector.load %arg7[%c14, %c0_65] : memref<16x32xf32, #tpu.memory_space<vmem>>, vector<2x32xf32>
    tpu.vector_store %arg7[%c14, %c0_65], %335 {strides = array<i32>} : memref<16x32xf32, #tpu.memory_space<vmem>>, vector<2x32xf32>,
    %c0_66 = arith.constant 0 : index
    %c0_67 = arith.constant 0 : index
    %337 = vector.load %arg6[%c0_66, %c0_67] : memref<8x32xf32, #tpu.memory_space<vmem>>, vector<2x32xf32>
    tpu.vector_store %arg6[%c0_66, %c0_67], %314 {strides = array<i32>} : memref<8x32xf32, #tpu.memory_space<vmem>>, vector<2x32xf32>,
    %c2_68 = arith.constant 2 : index
    %c0_69 = arith.constant 0 : index
    %338 = vector.load %arg6[%c2_68, %c0_69] : memref<8x32xf32, #tpu.memory_space<vmem>>, vector<2x32xf32>
    tpu.vector_store %arg6[%c2_68, %c0_69], %335 {strides = array<i32>} : memref<8x32xf32, #tpu.memory_space<vmem>>, vector<2x32xf32>,
    %c4_70 = arith.constant 4 : index
    %c0_71 = arith.constant 0 : index
    %339 = vector.load %arg6[%c4_70, %c0_71] : memref<8x32xf32, #tpu.memory_space<vmem>>, vector<2x32xf32>
    tpu.vector_store %arg6[%c4_70, %c0_71], %312 {strides = array<i32>} : memref<8x32xf32, #tpu.memory_space<vmem>>, vector<2x32xf32>,
    %c6_72 = arith.constant 6 : index
    %c0_73 = arith.constant 0 : index
    %340 = vector.load %arg6[%c6_72, %c0_73] : memref<8x32xf32, #tpu.memory_space<vmem>>, vector<2x32xf32>
    tpu.vector_store %arg6[%c6_72, %c0_73], %333 {strides = array<i32>} : memref<8x32xf32, #tpu.memory_space<vmem>>, vector<2x32xf32>,
    %c224 = arith.constant 224 : index
    %c0_74 = arith.constant 0 : index
    %341 = vector.load %arg2[%c224, %c0_74] : memref<256x128xbf16, #tpu.memory_space<vmem>>, vector<32x128xbf16>
    %c2_75 = arith.constant 2 : index
    %c0_76 = arith.constant 0 : index
    %342 = vector.load %arg3[%c2_75, %c0_76] : memref<3x128xf32, #tpu.memory_space<vmem>>, vector<1x128xf32>
    %c0_77 = arith.constant 0 : index
    %c0_78 = arith.constant 0 : index
    %343 = vector.load %arg7[%c0_77, %c0_78] : memref<16x32xf32, #tpu.memory_space<vmem>>, vector<16x32xf32>
    %344 = arith.truncf %343 : vector<16x32xf32> to vector<16x32xbf16>
    %cst_79 = arith.constant dense<0.000000e+00> : vector<16x128xf32>
    %345 = tpu.matmul %344, %341, %cst_79 {dimension_numbers = #tpu.dot_dimension_numbers<[1], [0], [0], [1], [0, 0, 1, 1], [], []>} : vector<16x32xbf16>, vector<32x128xbf16>, vector<16x128xf32> -> vector<16x128xf32>
    %346 = vector.broadcast %342 : vector<1x128xf32> to vector<16x128xf32>
    %347 = arith.addf %345, %346 : vector<16x128xf32>
    %cst_80 = arith.constant dense<0xFF800000> : vector<16xf32>
    %348 = vector.multi_reduction <maximumf>, %347, %cst_80 [1] : vector<16x128xf32> to vector<16xf32>
    %349 = vector.shape_cast %348 : vector<16xf32> to vector<16x1xf32>
    %350 = vector.broadcast %349 : vector<16x1xf32> to vector<16x128xf32>
    %351 = arith.subf %347, %350 : vector<16x128xf32>
    %352 = math.exp %351 : vector<16x128xf32>
    %cst_81 = arith.constant dense<0.000000e+00> : vector<16xf32>
    %353 = vector.multi_reduction <add>, %352, %cst_81 [1] : vector<16x128xf32> to vector<16xf32>
    %354 = vector.shape_cast %353 : vector<16xf32> to vector<16x1xf32>
    %355 = math.log %354 : vector<16x1xf32>
    %356 = vector.broadcast %355 : vector<16x1xf32> to vector<16x128xf32>
    %357 = arith.subf %351, %356 : vector<16x128xf32>
    %c0_82 = arith.constant 0 : index
    %c0_83 = arith.constant 0 : index
    %358 = vector.load %arg5[%c0_82, %c0_83] : memref<16x128xf32, #tpu.memory_space<vmem>>, vector<16x128xf32>
    tpu.vector_store %arg5[%c0_82, %c0_83], %357 {strides = array<i32>} : memref<16x128xf32, #tpu.memory_space<vmem>>, vector<16x128xf32>,
    return
  }
  func.func @transform_0(%arg0: i32) -> (i32, i32) {
    %c0_i32 = arith.constant 0 : i32
    %c0_i32_0 = arith.constant 0 : i32
    %c0_i32_1 = arith.constant 0 : i32
    return %c0_i32, %c0_i32_0 : i32, i32
  }
  func.func @transform_1(%arg0: i32) -> (i32, i32) {
    %c0_i32 = arith.constant 0 : i32
    %c0_i32_0 = arith.constant 0 : i32
    %c0_i32_1 = arith.constant 0 : i32
    return %c0_i32, %c0_i32_0 : i32, i32
  }
  func.func @transform_2(%arg0: i32) -> (i32, i32) {
    %c0_i32 = arith.constant 0 : i32
    %c0_i32_0 = arith.constant 0 : i32
    %c0_i32_1 = arith.constant 0 : i32
    return %c0_i32, %c0_i32_0 : i32, i32
  }
  func.func @transform_3(%arg0: i32) -> (i32, i32) {
    %c0_i32 = arith.constant 0 : i32
    %c0_i32_0 = arith.constant 0 : i32
    %c0_i32_1 = arith.constant 0 : i32
    return %c0_i32, %c0_i32_0 : i32, i32
  }
  func.func @transform_4(%arg0: i32) -> (i32, i32) {
    %c0_i32 = arith.constant 0 : i32
    %c0_i32_0 = arith.constant 0 : i32
    %c0_i32_1 = arith.constant 0 : i32
    return %c0_i32, %c0_i32_0 : i32, i32
  }
  func.func @transform_5(%arg0: i32) -> (i32, i32) {
    %c0_i32 = arith.constant 0 : i32
    %c0_i32_0 = arith.constant 0 : i32
    %c0_i32_1 = arith.constant 0 : i32
    return %c0_i32, %c0_i32_0 : i32, i32
  }
}

</mosaic_0001>

<bundles_post_ra>
// kernel: charnn_forward.1
= control target key start
LH: loop header
LB: loop body
LE: loop exit
PB: predicated region body
PF: predicated region fallthrough
CT: control target
= control target key end

     0   :  { %11 = vsyncpa [#allocation4], 0  ;;  %s2443_s18 = smov [#allocation3]   ;;  %s2921_s0 = inlined_call_operand.vmem [shape: bf16[16,128], index: 0, kind: input, shape index: {}]   ;;  %s2922_s1 = inlined_call_operand.hbm [shape: bf16[256,128], index: 1, kind: input, shape index: {}]   ;;  %s2923_s2 = inlined_call_operand.vmem [shape: f32[3,128], index: 2, kind: input, shape index: {}]   ;;  %s2924_s3 = inlined_call_operand.vmem [shape: f32[8,32], index: 3, kind: input, shape index: {}, may-alias: {3,5}]   ;;  %s2925_s4 = inlined_call_operand.vmem [shape: f32[16,128], index: 4, kind: output, shape index: {0}]   ;;  %s2926_s5 = inlined_call_operand.vmem [shape: f32[8,32], index: 5, kind: output, shape index: {1}, may-alias: {3,5}]  }
   0x1   :  { %s19_s19 = sshll.u32 %s2443_s18, 4  ;;  %s20_s19 = int_to_ptr.vmem [resolvable:$true] %s19_s19 }
   0x2   :  { %s2429_s20 = scalar_lea.vmem %s20_s19, 2048  ;;  %p2434_p1 = scmp.lt.s32.totalorder %s20_s19, %s20_s19 }
   0x3   :  { %p2430_p0 = scmp.ne.s32.totalorder %s20_s19, %s2429_s20  ;;  %p2435_p2 = scmp.lt.s32.totalorder %s2429_s20, %s2429_s20 }
   0x5   :  { %p2436_p3 = por %p2435_p2, %p2434_p1 }
   0x7   :  { %p2437_p4 = pnand %p2436_p3, %p2430_p0 }
   0x9   :  { %2440 = shalt.err (!%p2437_p4)
}
   0xa   :  { %s2444_s21 = smov 64   ;;  %s2445_s22 = smov 4  }
   0xb   :  { %25 = dma.hbm_to_vmem [thread:$0]  %s2922_s1, 2048, %s20_s19, [#allocation4], %s2444_s21, %s2444_s21, %s2445_s22  }
   0xc   :  { %2441 = dma.done.wait [#allocation4], 2048  }
   0xd   :  { %2442 = vsyncadd [#allocation4], 4294965248  ;;  %v2446_v0 = vmov 0.0   ;;  %vm2447_vm0 = vmmov 0   ;;  %v2265_v1 = vld [vmem:[#allocation3 + $0x38] sm:$0xff]   ;;  %v2266_v2 = vld [vmem:[#allocation3 + $0x30] sm:$0xff]  }
   0xe   :  { %2038 = vmatprep.subr.bf16.mxu0 %v2446_v0  ;;  %2058 = vmatprep.subr.bf16.mxu1 %v2446_v0  ;;  %v2267_v3 = vld [vmem:[#allocation3 + $0x28] sm:$0xff]   ;;  %v2496_v5 = vld [vmem:[#allocation3 + $0x40] sm:$0xff]   ;;  %v169_v6 = vld [vmem:[%s2924_s3] sm:$0x3]  ;;  %vm186_vm1 = vcmask 261120   ;;  %s2448_s6 = smov 32  }
   0xf   :  { %2062 = vmatprep.mubr.msk.bf16.mxu1 %vm2447_vm0, %v2446_v0  ;;  %2054 = vmatprep.mubr.msk.bf16.mxu0 %vm2447_vm0, %v2446_v0  ;;  %v2492_v4 = vld [vmem:[#allocation3 + $0x48] sm:$0xff]   ;;  %v2268_v7 = vld [vmem:[#allocation3 + $0x20] sm:$0xff]   ;;  %v173_v8 = vpack.c.bf16 %v169_v6, %v169_v6  ;;  %v2269_v9 = vld [vmem:[#allocation3 + $0x18] sm:$0xff]   ;;  %vm451_vm2 = vcmask 254976   ;;  %s2449_s18 = smov 96   ;;  %vm1781_vm3 = vcmask 261126  }
  0x10   :  { %2039 = vmatpush3.bf16.msra.mxu0 %v2265_v1  ;;  %2059 = vmatpush3.bf16.msra.mxu1 %v2492_v4  ;;  %v2270_v10 = vld [vmem:[#allocation3 + $0x10] sm:$0xff]   ;;  %v2272_v11 = vld [vmem:[#allocation3 + $0x8] sm:$0xff]   ;;  %v2274_v12 = vld [vmem:[#allocation3] sm:$0xff]  }
  0x11   :  { %2040 = vmatprep.subr.bf16.mxu0 %v2446_v0  ;;  %2060 = vmatprep.subr.bf16.mxu1 %v2446_v0  ;;  %v2275_v13 = vld [vmem:[%s2921_s0] sm:$0xff]   ;;  %v2545_v42 = vld [vmem:[#allocation3 + $0x58] sm:$0xff]   ;;  %v2555_v45 = vld [vmem:[#allocation3 + $0x68] sm:$0xff]  }
  0x12   :  { %v1894_v18 = vld [vmem:[%s2923_s2] ss:$0 sm:$0xff]  ;;  %v171_v27 = vld [vmem:[%s2924_s3 + $0x4] sm:$0x3]  ;;  %v2560_v46 = vld [vmem:[#allocation3 + $0x60] sm:$0xff]  }
  0x13   :  { %v2549_v44 = vld [vmem:[#allocation3 + $0x50] sm:$0xff]  }
  0x14   :  { %2041 = vmatpush3.bf16.msra.mxu0 %v2266_v2  ;;  %2061 = vmatpush3.bf16.msra.mxu1 %v2496_v5  ;;  %v170_v47 = vld [vmem:[%s2924_s3 + $0x2] sm:$0x3]  ;;  %v2581_v57 = vld [vmem:[%s2923_s2 + $0x1] ss:$0 sm:$0xff] }
  0x15   :  { %2042 = vmatprep.subr.bf16.mxu0 %v2446_v0  ;;  %2066 = vmatprep.subr.bf16.mxu1 %v2446_v0  ;;  %v260_v48 = vpack.c.bf16 %v170_v47, %v170_v47 }
  0x17   :  { %2063 = vmatmul.mubr.msk.bf16.vlgmr.msra.gmra.mxu1 %vm186_vm1, %v173_v8 }
  0x18   :  { %2043 = vmatpush3.bf16.msra.mxu0 %v2267_v3  ;;  %2067 = vmatpush3.bf16.msra.mxu1 %v2492_v4 }
  0x19   :  { %2044 = vmatprep.subr.bf16.mxu0 %v2446_v0  ;;  %2070 = vmatprep.mubr.msk.bf16.mxu1 %vm2447_vm0, %v2446_v0 }
  0x1a   :  { %2068 = vmatprep.subr.bf16.mxu1 %v2446_v0 }
  0x1c   :  { %2045 = vmatpush3.bf16.msra.mxu0 %v2268_v7  ;;  %2069 = vmatpush3.bf16.msra.mxu1 %v2496_v5  ;;  %v172_v7 = vld [vmem:[%s2924_s3 + $0x6] sm:$0x3] }
  0x1d   :  { %2046 = vmatprep.subr.bf16.mxu0 %v2446_v0  ;;  %2074 = vmatprep.subr.bf16.mxu1 %v2446_v0 }
  0x20   :  { %2047 = vmatpush3.bf16.msra.mxu0 %v2269_v9 }
  0x21   :  { %2048 = vmatprep.subr.bf16.mxu0 %v2446_v0 }
  0x24   :  { %2049 = vmatpush3.bf16.msra.mxu0 %v2270_v10 }
  0x25   :  { %2050 = vmatprep.subr.bf16.mxu0 %v2446_v0 }
  0x28   :  { %2051 = vmatpush3.bf16.msra.mxu0 %v2272_v11 }
  0x29   :  { %2052 = vmatprep.subr.bf16.mxu0 %v2446_v0 }
  0x2c   :  { %2053 = vmatpush3.bf16.msra.mxu0 %v2274_v12 }
  0x2d   :  { %2090 = vmatprep.subr.bf16.mxu0 %v2446_v0 }
  0x2f   :  { %2055 = vmatmul.mubr.bf16.vlgmr.msra.gmra.mxu0 %v2275_v13 }
  0x30   :  { %2091 = vmatpush3.bf16.msra.mxu0 %v2492_v4  ;;  %2094 = vmatprep.mubr.msk.bf16.mxu0 %vm2447_vm0, %v2446_v0 }
  0x31   :  { %2092 = vmatprep.subr.bf16.mxu0 %v2446_v0 }
  0x34   :  { %2093 = vmatpush3.bf16.msra.mxu0 %v2496_v5 }
  0x35   :  { %2106 = vmatprep.subr.bf16.mxu0 %v2446_v0 }
  0xd7   :  { %v224_v14 = vpop.f32.mrf.mxu1 }
  0xd9   :  { %v2064_v15 = vpop.f32.mrf.mxu1 }
  0xdb   :  { %v227_v16 = vpop.f32.mrf.mxu1 }
  0xdd   :  { %v2065_v17 = vpop.f32.mrf.mxu1 }
  0xef   :  { %v162_v19 = vpop.f32.mrf.mxu0 }
  0xf0   :  { %v2529_v20 = vadd.f32 %v1894_v18, %v162_v19 }
  0xf1   :  { %v2056_v21 = vpop.f32.mrf.mxu0 }
  0xf2   :  { %v230_v22 = vadd.f32 %v224_v14, %v2529_v20 }
  0xf3   :  { %v165_v23 = vpop.f32.mrf.mxu0 }
  0xf4   :  { %v2532_v24 = vadd.f32 %v1894_v18, %v165_v23  ;;  %2282 = vtanh.f32 %v230_v22  ;;  %v1907_v28 = vmul.f32 -1.442695, %v230_v22 }
  0xf5   :  { %v2057_v25 = vpop.f32.mrf.mxu0 }
  0xf6   :  { %2284 = vpow2.f32 %v1907_v28 }
 0x101   :  { %v2283_v26 = vpop.eup %2282 }
 0x102   :  { %244 = vrot.lane.b32.xlu0 %v2283_v26, %s2444_s21 }
 0x103   :  { %v2285_v29 = vpop.eup %2284 }
 0x104   :  { %v234_v30 = vadd.f32 1.0, %v2285_v29 }
 0x106   :  { %239 = vrot.lane.b32.xlu0 %v171_v27, %s2448_s6  ;;  %2286 = vrcp.f32 %v234_v30 }
 0x113   :  { %v2287_v31 = vpop.eup %2286 }
 0x174   :  { %v245_v32 = vpop.permute.xlu0 %244 }
 0x175   :  { %v247_v33 = vmul.f32 %v2287_v31, %v245_v32 }
 0x177   :  { %249 = vrot.lane.b32.xlu1 %v247_v33, %s2448_s6 }
 0x178   :  { %v240_v34 = vpop.permute.xlu0 %239 }
 0x179   :  { %v242_v35 = vmul.f32 %v2287_v31, %v240_v34 }
 0x1e9   :  { %v250_v36 = vpop.permute.xlu1 %249 }
 0x1ea   :  { %v2540_v37 = vadd.f32 %v250_v36, %v242_v35 }
 0x1ec   :  { %2288 = vtanh.f32 %v2540_v37  ;;  %v461_v21 = vrot.slane %v2540_v37, 6 }
 0x1f9   :  { %v2289_v38 = vpop.eup %2288 }
 0x1fa   :  { %255 = vrot.lane.b32.xlu1 %v2289_v38, %s2444_s21 }
 0x26c   :  { %v256_v39 = vpop.permute.xlu1 %255 }
 0x26d   :  { %v258_v40 = vmul.f32 %v2287_v31, %v256_v39 }
 0x26f   :  { %v259_v41 = vpack.c.bf16 %v258_v40, %v258_v40 }
 0x271   :  { %262 = vrot.lane.b32.xlu0 %v259_v41, %s2448_s6 }
 0x2e3   :  { %v263_v43 = vpop.permute.xlu0 %262 }
 0x2e4   :  { %2071 = vmatmul.mubr.msk.bf16.vlgmr.msra.gmra.mxu1 %vm186_vm1, %v263_v43 }
 0x2e5   :  { %2075 = vmatpush3.bf16.msra.mxu1 %v2545_v42  ;;  %2078 = vmatprep.mubr.msk.bf16.mxu1 %vm2447_vm0, %v2446_v0 }
 0x2e6   :  { %2076 = vmatprep.subr.bf16.mxu1 %v2446_v0 }
 0x2e9   :  { %2077 = vmatpush3.bf16.msra.mxu1 %v2549_v44 }
 0x2ea   :  { %2082 = vmatprep.subr.bf16.mxu1 %v2446_v0 }
 0x2ec   :  { %2079 = vmatmul.mubr.msk.bf16.vlgmr.msra.gmra.mxu1 %vm186_vm1, %v263_v43 }
 0x2ed   :  { %2083 = vmatpush3.bf16.msra.mxu1 %v2555_v45  ;;  %2086 = vmatprep.mubr.msk.bf16.mxu1 %vm2447_vm0, %v2446_v0 }
 0x2ee   :  { %2084 = vmatprep.subr.bf16.mxu1 %v2446_v0 }
 0x2f1   :  { %2085 = vmatpush3.bf16.msra.mxu1 %v2560_v46 }
 0x2f2   :  { %2098 = vmatprep.subr.bf16.mxu1 %v2446_v0 }
 0x2f4   :  { %2087 = vmatmul.mubr.msk.bf16.vlgmr.msra.gmra.mxu1 %vm186_vm1, %v260_v48 }
 0x2f5   :  { %2099 = vmatpush3.bf16.msra.mxu1 %v2545_v42  ;;  %2102 = vmatprep.mubr.msk.bf16.mxu1 %vm2447_vm0, %v2446_v0 }
 0x2f6   :  { %2100 = vmatprep.subr.bf16.mxu1 %v2446_v0 }
 0x2f9   :  { %2101 = vmatpush3.bf16.msra.mxu1 %v2549_v44 }
 0x2fa   :  { %2114 = vmatprep.subr.bf16.mxu1 %v2446_v0 }
 0x3a4   :  { %v301_v49 = vpop.f32.mrf.mxu1 }
 0x3a5   :  { %v308_v50 = vrot.slane %v301_v49, 6 }
 0x3a6   :  { %v2072_v51 = vpop.f32.mrf.mxu1 }
 0x3a7   :  { %v310_v52 = vadd.f32 %v308_v50, %v2529_v20 }
 0x3a8   :  { %v304_v53 = vpop.f32.mrf.mxu1 }
 0x3a9   :  { %2290 = vtanh.f32 %v310_v52  ;;  %v1916_v8 = vmul.f32 -1.442695, %v310_v52 }
 0x3aa   :  { %v2073_v54 = vpop.f32.mrf.mxu1 }
 0x3ac   :  { %v357_v55 = vpop.f32.mrf.mxu1 }
 0x3ad   :  { %v358_v60 = vadd.f32 %v2581_v57, %v357_v55 }
 0x3ae   :  { %v2080_v56 = vpop.f32.mrf.mxu1 }
 0x3b0   :  { %v360_v58 = vpop.f32.mrf.mxu1 }
 0x3b2   :  { %v2081_v59 = vpop.f32.mrf.mxu1 }
 0x3b4   :  { %v412_v61 = vpop.f32.mrf.mxu1 }
 0x3b5   :  { %v418_v62 = vadd.f32 %v412_v61, %v358_v60 }
 0x3b6   :  { %v2291_v63 = vpop.eup %2290  ;;  %v2088_v1 = vpop.f32.mrf.mxu1 }
 0x3b7   :  { %2292 = vtanh.f32 %v418_v62  ;;  %465 = vrot.lane.b32.xlu1 %v2291_v63, %s2444_s21  ;;  %v1915_v9 = vmul.f32 -1.442695, %v418_v62 }
 0x3b8   :  { %v415_v2 = vpop.f32.mrf.mxu1  ;;  %2294 = vpow2.f32 %v1916_v8 }
 0x3b9   :  { %2296 = vpow2.f32 %v1915_v9 }
 0x3ba   :  { %v2089_v3 = vpop.f32.mrf.mxu1 }
 0x3c4   :  { %v2293_v6 = vpop.eup %2292 }
 0x3c5   :  { %432 = vrot.lane.b32.xlu0 %v2293_v6, %s2444_s21  ;;  %v2295_v10 = vpop.eup %2294 }
 0x3c6   :  { %v456_v11 = vadd.f32 1.0, %v2295_v10  ;;  %v2297_v12 = vpop.eup %2296 }
 0x3c7   :  { %v422_v13 = vadd.f32 1.0, %v2297_v12 }
 0x3c8   :  { %2298 = vrcp.f32 %v456_v11 }
 0x3c9   :  { %427 = vrot.lane.b32.xlu0 %v172_v7, %s2448_s6  ;;  %2300 = vrcp.f32 %v422_v13 }
 0x3d5   :  { %v2299_v14 = vpop.eup %2298 }
 0x3d6   :  { %v2301_v17 = vpop.eup %2300  ;;  %v463_v22 = vmul.f32 %v2299_v14, %v461_v21 }
 0x429   :  { %v466_v15 = vpop.permute.xlu1 %465 }
 0x42a   :  { %v468_v16 = vmul.f32 %v2299_v14, %v466_v15 }
 0x42c   :  { %470 = vrot.lane.b32.xlu1 %v468_v16, %s2448_s6 }
 0x437   :  { %v433_v18 = vpop.permute.xlu0 %432 }
 0x438   :  { %v435_v19 = vmul.f32 %v2301_v17, %v433_v18 }
 0x43a   :  { %437 = vrot.lane.b32.xlu1 %v435_v19, %s2448_s6 }
 0x43b   :  { %v428_v26 = vpop.permute.xlu0 %427 }
 0x43c   :  { %v430_v27 = vmul.f32 %v2301_v17, %v428_v26 }
 0x49e   :  { %v471_v23 = vpop.permute.xlu1 %470 }
 0x49f   :  { %v2593_v25 = vadd.f32 %v471_v23, %v463_v22 }
 0x4a1   :  { %2302 = vtanh.f32 %v2593_v25  ;;  %v657_v15 = vrot.slane %v2593_v25, 6 }
 0x4ac   :  { %v438_v28 = vpop.permute.xlu1 %437 }
 0x4ad   :  { %v2596_v29 = vadd.f32 %v438_v28, %v430_v27 }
 0x4ae   :  { %v2303_v30 = vpop.eup %2302 }
 0x4af   :  { %2304 = vtanh.f32 %v2596_v29  ;;  %476 = vrot.lane.b32.xlu0 %v2303_v30, %s2444_s21 }
 0x4bc   :  { %v2305_v31 = vpop.eup %2304 }
 0x4bd   :  { %443 = vrot.lane.b32.xlu1 %v2305_v31, %s2444_s21 }
 0x521   :  { %v477_v32 = vpop.permute.xlu0 %476 }
 0x522   :  { %v479_v33 = vmul.f32 %v2299_v14, %v477_v32 }
 0x524   :  { %v480_v34 = vpack.c.bf16 %v479_v33, %v479_v33 }
 0x526   :  { %v483_v35 = vrot.slane %v480_v34, 1 }
 0x528   :  { %484 = vrot.lane.b32.xlu0 %v483_v35, %s2448_s6 }
 0x52f   :  { %v444_v36 = vpop.permute.xlu1 %443 }
 0x530   :  { %v2602_v37 = vmul.f32 %v2301_v17, %v444_v36 }
 0x532   :  { %v481_v38 = vpack.c.bf16 %v2602_v37, %v2602_v37 }
 0x534   :  { %574 = vrot.lane.b32.xlu1 %v481_v38, %s2448_s6 }
 0x59a   :  { %v485_v39 = vpop.permute.xlu0 %484 }
 0x59b   :  { %2095 = vmatmul.mubr.msk.bf16.vlgmr.msra.gmra.mxu0 %vm186_vm1, %v485_v39  ;;  %2103 = vmatmul.mubr.msk.bf16.vlgmr.msra.gmra.mxu1 %vm186_vm1, %v485_v39 }
 0x59c   :  { %2107 = vmatpush3.bf16.msra.mxu0 %v2555_v45  ;;  %2110 = vmatprep.mubr.msk.bf16.mxu0 %vm2447_vm0, %v2446_v0 }
 0x59d   :  { %2108 = vmatprep.subr.bf16.mxu0 %v2446_v0  ;;  %2115 = vmatpush3.bf16.msra.mxu1 %v2492_v4 }
 0x59e   :  { %2116 = vmatprep.subr.bf16.mxu1 %v2446_v0  ;;  %2118 = vmatprep.mubr.msk.bf16.mxu1 %vm2447_vm0, %v2446_v0 }
 0x5a0   :  { %2109 = vmatpush3.bf16.msra.mxu0 %v2560_v46 }
 0x5a1   :  { %2122 = vmatprep.subr.bf16.mxu0 %v2446_v0  ;;  %2117 = vmatpush3.bf16.msra.mxu1 %v2496_v5 }
 0x5a2   :  { %2130 = vmatprep.subr.bf16.mxu1 %v2446_v0 }
 0x5a6   :  { %v575_v40 = vpop.permute.xlu1 %574 }
 0x5a7   :  { %2111 = vmatmul.mubr.msk.bf16.vlgmr.msra.gmra.mxu0 %vm186_vm1, %v575_v40 }
 0x5a8   :  { %2123 = vmatpush3.bf16.msra.mxu0 %v2545_v42  ;;  %2126 = vmatprep.mubr.msk.bf16.mxu0 %vm2447_vm0, %v2446_v0 }
 0x5a9   :  { %2124 = vmatprep.subr.bf16.mxu0 %v2446_v0 }
 0x5ac   :  { %2125 = vmatpush3.bf16.msra.mxu0 %v2549_v44 }
 0x5ad   :  { %2138 = vmatprep.subr.bf16.mxu0 %v2446_v0 }
 0x65b   :  { %v523_v41 = vpop.f32.mrf.mxu0  ;;  %v567_v43 = vpop.f32.mrf.mxu1 }
 0x65c   :  { %v530_v47 = vrot.slane %v523_v41, 4  ;;  %v568_v55 = vadd.f32 %v2581_v57, %v567_v43 }
 0x65d   :  { %v2096_v48 = vpop.f32.mrf.mxu0  ;;  %v2104_v49 = vpop.f32.mrf.mxu1 }
 0x65e   :  { %v532_v50 = vadd.f32 %v530_v47, %v2529_v20 }
 0x65f   :  { %v526_v51 = vpop.f32.mrf.mxu0  ;;  %v570_v52 = vpop.f32.mrf.mxu1 }
 0x660   :  { %2306 = vtanh.f32 %v532_v50  ;;  %v1921_v1 = vmul.f32 -1.442695, %v532_v50 }
 0x661   :  { %v2097_v53 = vpop.f32.mrf.mxu0  ;;  %v2105_v54 = vpop.f32.mrf.mxu1 }
 0x667   :  { %v613_v56 = vpop.f32.mrf.mxu0 }
 0x668   :  { %v619_v58 = vadd.f32 %v613_v56, %v568_v55 }
 0x669   :  { %v2112_v59 = vpop.f32.mrf.mxu0 }
 0x66a   :  { %2308 = vtanh.f32 %v619_v58  ;;  %v1920_v2 = vmul.f32 -1.442695, %v619_v58 }
 0x66b   :  { %v616_v60 = vpop.f32.mrf.mxu0  ;;  %2310 = vpow2.f32 %v1921_v1 }
 0x66c   :  { %2312 = vpow2.f32 %v1920_v2 }
 0x66d   :  { %v2307_v61 = vpop.eup %2306  ;;  %v2113_v62 = vpop.f32.mrf.mxu0 }
 0x66e   :  { %661 = vrot.lane.b32.xlu0 %v2307_v61, %s2444_s21 }
 0x677   :  { %v2309_v63 = vpop.eup %2308 }
 0x678   :  { %629 = vrot.lane.b32.xlu1 %v2309_v63, %s2444_s21  ;;  %v2311_v3 = vpop.eup %2310 }
 0x679   :  { %v652_v6 = vadd.f32 1.0, %v2311_v3  ;;  %v2313_v7 = vpop.eup %2312 }
 0x67a   :  { %v623_v8 = vadd.f32 1.0, %v2313_v7 }
 0x67b   :  { %2314 = vrcp.f32 %v652_v6 }
 0x67c   :  { %2316 = vrcp.f32 %v623_v8 }
 0x688   :  { %v2315_v9 = vpop.eup %2314 }
 0x689   :  { %v2317_v12 = vpop.eup %2316  ;;  %v659_v16 = vmul.f32 %v2315_v9, %v657_v15 }
 0x68a   :  { %v627_v19 = vmul.f32 %v2317_v12, %v2596_v29 }
 0x6e0   :  { %v662_v10 = vpop.permute.xlu0 %661 }
 0x6e1   :  { %v664_v11 = vmul.f32 %v2315_v9, %v662_v10 }
 0x6e3   :  { %666 = vrot.lane.b32.xlu0 %v664_v11, %s2448_s6 }
 0x6ea   :  { %v630_v13 = vpop.permute.xlu1 %629 }
 0x6eb   :  { %v632_v14 = vmul.f32 %v2317_v12, %v630_v13 }
 0x6ed   :  { %634 = vrot.lane.b32.xlu1 %v632_v14, %s2448_s6 }
 0x755   :  { %v667_v17 = vpop.permute.xlu0 %666 }
 0x756   :  { %v2635_v18 = vadd.f32 %v667_v17, %v659_v16 }
 0x758   :  { %2318 = vtanh.f32 %v2635_v18 }
 0x75f   :  { %v635_v21 = vpop.permute.xlu1 %634 }
 0x760   :  { %v2639_v22 = vadd.f32 %v635_v21, %v627_v19 }
 0x762   :  { %2320 = vtanh.f32 %v2639_v22 }
 0x765   :  { %v2319_v23 = vpop.eup %2318 }
 0x766   :  { %672 = vrot.lane.b32.xlu0 %v2319_v23, %s2444_s21 }
 0x76f   :  { %v2321_v26 = vpop.eup %2320 }
 0x770   :  { %640 = vrot.lane.b32.xlu1 %v2321_v26, %s2444_s21 }
 0x7d8   :  { %v673_v25 = vpop.permute.xlu0 %672 }
 0x7d9   :  { %v675_v27 = vmul.f32 %v2315_v9, %v673_v25  ;;  %v853_v9 = vrot.slane %v2635_v18, 6 }
 0x7db   :  { %v676_v28 = vpack.c.bf16 %v675_v27, %v675_v27 }
 0x7dd   :  { %v679_v30 = vrot.slane %v676_v28, 2 }
 0x7df   :  { %680 = vrot.lane.b32.xlu0 %v679_v30, %s2448_s6 }
 0x7e2   :  { %v641_v31 = vpop.permute.xlu1 %640 }
 0x7e3   :  { %v2645_v32 = vmul.f32 %v2317_v12, %v641_v31 }
 0x7e5   :  { %v677_v29 = vpack.c.bf16 %v2645_v32, %v2645_v32 }
 0x7e7   :  { %770 = vrot.lane.b32.xlu1 %v677_v29, %s2448_s6 }
 0x851   :  { %v681_v33 = vpop.permute.xlu0 %680 }
 0x852   :  { %2119 = vmatmul.mubr.msk.bf16.vlgmr.msra.gmra.mxu1 %vm186_vm1, %v681_v33  ;;  %2127 = vmatmul.mubr.msk.bf16.vlgmr.msra.gmra.mxu0 %vm186_vm1, %v681_v33 }
 0x853   :  { %2131 = vmatpush3.bf16.msra.mxu1 %v2555_v45  ;;  %2134 = vmatprep.mubr.msk.bf16.mxu1 %vm2447_vm0, %v2446_v0 }
 0x854   :  { %2132 = vmatprep.subr.bf16.mxu1 %v2446_v0  ;;  %2139 = vmatpush3.bf16.msra.mxu0 %v2492_v4 }
 0x855   :  { %2140 = vmatprep.subr.bf16.mxu0 %v2446_v0  ;;  %2142 = vmatprep.mubr.msk.bf16.mxu0 %vm2447_vm0, %v2446_v0 }
 0x857   :  { %2133 = vmatpush3.bf16.msra.mxu1 %v2560_v46 }
 0x858   :  { %2146 = vmatprep.subr.bf16.mxu1 %v2446_v0  ;;  %2141 = vmatpush3.bf16.msra.mxu0 %v2496_v5 }
 0x859   :  { %v771_v34 = vpop.permute.xlu1 %770  ;;  %2154 = vmatprep.subr.bf16.mxu0 %v2446_v0 }
 0x85a   :  { %2135 = vmatmul.mubr.msk.bf16.vlgmr.msra.gmra.mxu1 %vm186_vm1, %v771_v34 }
 0x85b   :  { %2147 = vmatpush3.bf16.msra.mxu1 %v2545_v42  ;;  %2150 = vmatprep.mubr.msk.bf16.mxu1 %vm2447_vm0, %v2446_v0 }
 0x85c   :  { %2148 = vmatprep.subr.bf16.mxu1 %v2446_v0 }
 0x85f   :  { %2149 = vmatpush3.bf16.msra.mxu1 %v2549_v44 }
 0x860   :  { %2162 = vmatprep.subr.bf16.mxu1 %v2446_v0 }
 0x912   :  { %v719_v35 = vpop.f32.mrf.mxu1  ;;  %v763_v36 = vpop.f32.mrf.mxu0 }
 0x913   :  { %v726_v38 = vrot.slane %v719_v35, 2  ;;  %v764_v50 = vadd.f32 %v2581_v57, %v763_v36 }
 0x914   :  { %v2120_v39 = vpop.f32.mrf.mxu1  ;;  %v2128_v40 = vpop.f32.mrf.mxu0 }
 0x915   :  { %v728_v41 = vadd.f32 %v726_v38, %v2529_v20 }
 0x916   :  { %v722_v43 = vpop.f32.mrf.mxu1  ;;  %v766_v47 = vpop.f32.mrf.mxu0 }
 0x917   :  { %2322 = vtanh.f32 %v728_v41  ;;  %v1926_v20 = vmul.f32 -1.442695, %v728_v41 }
 0x918   :  { %v2121_v48 = vpop.f32.mrf.mxu1  ;;  %v2129_v49 = vpop.f32.mrf.mxu0 }
 0x91a   :  { %v809_v51 = vpop.f32.mrf.mxu1 }
 0x91b   :  { %v815_v52 = vadd.f32 %v809_v51, %v764_v50 }
 0x91c   :  { %v2136_v53 = vpop.f32.mrf.mxu1 }
 0x91d   :  { %2324 = vtanh.f32 %v815_v52  ;;  %v1925_v59 = vmul.f32 -1.442695, %v815_v52 }
 0x91e   :  { %v812_v54 = vpop.f32.mrf.mxu1  ;;  %2326 = vpow2.f32 %v1926_v20 }
 0x91f   :  { %2328 = vpow2.f32 %v1925_v59 }
 0x920   :  { %v2137_v55 = vpop.f32.mrf.mxu1 }
 0x924   :  { %v2323_v56 = vpop.eup %2322 }
 0x925   :  { %857 = vrot.lane.b32.xlu0 %v2323_v56, %s2444_s21 }
 0x92a   :  { %v2325_v58 = vpop.eup %2324 }
 0x92b   :  { %825 = vrot.lane.b32.xlu1 %v2325_v58, %s2444_s21  ;;  %v2327_v60 = vpop.eup %2326 }
 0x92c   :  { %v848_v61 = vadd.f32 1.0, %v2327_v60  ;;  %v2329_v62 = vpop.eup %2328 }
 0x92d   :  { %v819_v63 = vadd.f32 1.0, %v2329_v62 }
 0x92e   :  { %2330 = vrcp.f32 %v848_v61 }
 0x92f   :  { %2332 = vrcp.f32 %v819_v63 }
 0x93b   :  { %v2331_v1 = vpop.eup %2330 }
 0x93c   :  { %v2333_v6 = vpop.eup %2332  ;;  %v855_v10 = vmul.f32 %v2331_v1, %v853_v9 }
 0x93d   :  { %v823_v13 = vmul.f32 %v2333_v6, %v2639_v22 }
 0x997   :  { %v858_v2 = vpop.permute.xlu0 %857 }
 0x998   :  { %v860_v3 = vmul.f32 %v2331_v1, %v858_v2 }
 0x99a   :  { %862 = vrot.lane.b32.xlu0 %v860_v3, %s2448_s6 }
 0x99d   :  { %v826_v7 = vpop.permute.xlu1 %825 }
 0x99e   :  { %v828_v8 = vmul.f32 %v2333_v6, %v826_v7 }
 0x9a0   :  { %830 = vrot.lane.b32.xlu1 %v828_v8, %s2448_s6 }
 0xa0c   :  { %v863_v11 = vpop.permute.xlu0 %862 }
 0xa0d   :  { %v2678_v12 = vadd.f32 %v863_v11, %v855_v10 }
 0xa0f   :  { %2334 = vtanh.f32 %v2678_v12 }
 0xa12   :  { %v831_v14 = vpop.permute.xlu1 %830 }
 0xa13   :  { %v2682_v15 = vadd.f32 %v831_v14, %v823_v13 }
 0xa15   :  { %2336 = vtanh.f32 %v2682_v15 }
 0xa1c   :  { %v2335_v16 = vpop.eup %2334 }
 0xa1d   :  { %868 = vrot.lane.b32.xlu0 %v2335_v16, %s2444_s21 }
 0xa22   :  { %v2337_v17 = vpop.eup %2336 }
 0xa23   :  { %836 = vrot.lane.b32.xlu1 %v2337_v17, %s2444_s21 }
 0xa8f   :  { %v869_v18 = vpop.permute.xlu0 %868 }
 0xa90   :  { %v871_v19 = vmul.f32 %v2331_v1, %v869_v18  ;;  %v1046_v1 = vrot.slane %v2678_v12, 6 }
 0xa92   :  { %v872_v21 = vpack.c.bf16 %v871_v19, %v871_v19 }
 0xa94   :  { %v875_v23 = vrot.slane %v872_v21, 3 }
 0xa95   :  { %v837_v26 = vpop.permute.xlu1 %836 }
 0xa96   :  { %v2687_v25 = vmul.f32 %v2333_v6, %v837_v26  ;;  %876 = vrot.lane.b32.xlu0 %v875_v23, %s2448_s6 }
 0xa98   :  { %v873_v22 = vpack.c.bf16 %v2687_v25, %v2687_v25 }
 0xa9a   :  { %963 = vrot.lane.b32.xlu1 %v873_v22, %s2448_s6 }
 0xb08   :  { %v877_v27 = vpop.permute.xlu0 %876 }
 0xb09   :  { %2143 = vmatmul.mubr.msk.bf16.vlgmr.msra.gmra.mxu0 %vm186_vm1, %v877_v27  ;;  %2151 = vmatmul.mubr.msk.bf16.vlgmr.msra.gmra.mxu1 %vm186_vm1, %v877_v27 }
 0xb0a   :  { %2155 = vmatpush3.bf16.msra.mxu0 %v2555_v45  ;;  %2158 = vmatprep.mubr.msk.bf16.mxu0 %vm2447_vm0, %v2446_v0 }
 0xb0b   :  { %2156 = vmatprep.subr.bf16.mxu0 %v2446_v0  ;;  %2163 = vmatpush3.bf16.msra.mxu1 %v2492_v4 }
 0xb0c   :  { %2164 = vmatprep.subr.bf16.mxu1 %v2446_v0  ;;  %2166 = vmatprep.mubr.msk.bf16.mxu1 %vm2447_vm0, %v2446_v0  ;;  %v964_v28 = vpop.permute.xlu1 %963 }
 0xb0e   :  { %2157 = vmatpush3.bf16.msra.mxu0 %v2560_v46 }
 0xb0f   :  { %2170 = vmatprep.subr.bf16.mxu0 %v2446_v0  ;;  %2165 = vmatpush3.bf16.msra.mxu1 %v2496_v5 }
 0xb10   :  { %2178 = vmatprep.subr.bf16.mxu1 %v2446_v0 }
 0xb11   :  { %2159 = vmatmul.mubr.msk.bf16.vlgmr.msra.gmra.mxu0 %vm186_vm1, %v964_v28 }
 0xb12   :  { %2171 = vmatpush3.bf16.msra.mxu0 %v2545_v42  ;;  %2174 = vmatprep.mubr.msk.bf16.mxu0 %vm2447_vm0, %v2446_v0 }
 0xb13   :  { %2172 = vmatprep.subr.bf16.mxu0 %v2446_v0 }
 0xb16   :  { %2173 = vmatpush3.bf16.msra.mxu0 %v2549_v44 }
 0xb17   :  { %2186 = vmatprep.subr.bf16.mxu0 %v2446_v0 }
 0xbc9   :  { %v915_v30 = vpop.f32.mrf.mxu0  ;;  %v956_v31 = vpop.f32.mrf.mxu1 }
 0xbca   :  { %v921_v29 = vadd.f32 %v915_v30, %v2532_v24  ;;  %v957_v40 = vadd.f32 %v2581_v57, %v956_v31 }
 0xbcb   :  { %v2144_v33 = vpop.f32.mrf.mxu0  ;;  %v2152_v34 = vpop.f32.mrf.mxu1 }
 0xbcc   :  { %2338 = vtanh.f32 %v921_v29  ;;  %v1931_v52 = vmul.f32 -1.442695, %v921_v29 }
 0xbcd   :  { %v918_v35 = vpop.f32.mrf.mxu0  ;;  %v959_v36 = vpop.f32.mrf.mxu1 }
 0xbcf   :  { %v2145_v38 = vpop.f32.mrf.mxu0  ;;  %v2153_v39 = vpop.f32.mrf.mxu1 }
 0xbd1   :  { %v1002_v41 = vpop.f32.mrf.mxu0 }
 0xbd2   :  { %v1008_v43 = vadd.f32 %v1002_v41, %v957_v40 }
 0xbd3   :  { %v2160_v47 = vpop.f32.mrf.mxu0 }
 0xbd4   :  { %2340 = vtanh.f32 %v1008_v43  ;;  %v1930_v53 = vmul.f32 -1.442695, %v1008_v43 }
 0xbd5   :  { %v1005_v48 = vpop.f32.mrf.mxu0  ;;  %2342 = vpow2.f32 %v1931_v52 }
 0xbd6   :  { %2344 = vpow2.f32 %v1930_v53 }
 0xbd7   :  { %v2161_v49 = vpop.f32.mrf.mxu0 }
 0xbd9   :  { %v2339_v50 = vpop.eup %2338 }
 0xbda   :  { %1050 = vrot.lane.b32.xlu0 %v2339_v50, %s2444_s21 }
 0xbe1   :  { %v2341_v51 = vpop.eup %2340 }
 0xbe2   :  { %1018 = vrot.lane.b32.xlu1 %v2341_v51, %s2444_s21  ;;  %v2343_v54 = vpop.eup %2342 }
 0xbe3   :  { %v1041_v55 = vadd.f32 1.0, %v2343_v54  ;;  %v2345_v56 = vpop.eup %2344 }
 0xbe4   :  { %v1012_v58 = vadd.f32 1.0, %v2345_v56 }
 0xbe5   :  { %2346 = vrcp.f32 %v1041_v55 }
 0xbe6   :  { %2348 = vrcp.f32 %v1012_v58 }
 0xbf2   :  { %v2347_v20 = vpop.eup %2346 }
 0xbf3   :  { %v2349_v61 = vpop.eup %2348  ;;  %v1048_v2 = vmul.f32 %v2347_v20, %v1046_v1 }
 0xbf4   :  { %v1016_v7 = vmul.f32 %v2349_v61, %v2682_v15 }
 0xc4c   :  { %v1051_v59 = vpop.permute.xlu0 %1050 }
 0xc4d   :  { %v1053_v60 = vmul.f32 %v2347_v20, %v1051_v59 }
 0xc4f   :  { %1055 = vrot.lane.b32.xlu0 %v1053_v60, %s2448_s6 }
 0xc54   :  { %v1019_v62 = vpop.permute.xlu1 %1018 }
 0xc55   :  { %v1021_v63 = vmul.f32 %v2349_v61, %v1019_v62 }
 0xc57   :  { %1023 = vrot.lane.b32.xlu1 %v1021_v63, %s2448_s6 }
 0xcc1   :  { %v1056_v3 = vpop.permute.xlu0 %1055 }
 0xcc2   :  { %v2721_v6 = vadd.f32 %v1056_v3, %v1048_v2 }
 0xcc4   :  { %2350 = vtanh.f32 %v2721_v6  ;;  %v1241_v58 = vrot.slane %v2721_v6, 6 }
 0xcc9   :  { %v1024_v8 = vpop.permute.xlu1 %1023 }
 0xcca   :  { %v2725_v9 = vadd.f32 %v1024_v8, %v1016_v7 }
 0xccc   :  { %2352 = vtanh.f32 %v2725_v9 }
 0xcd1   :  { %v2351_v10 = vpop.eup %2350 }
 0xcd2   :  { %1061 = vrot.lane.b32.xlu0 %v2351_v10, %s2444_s21 }
 0xcd9   :  { %v2353_v11 = vpop.eup %2352 }
 0xcda   :  { %1029 = vrot.lane.b32.xlu1 %v2353_v11, %s2444_s21 }
 0xd44   :  { %v1062_v12 = vpop.permute.xlu0 %1061 }
 0xd45   :  { %v1064_v13 = vmul.f32 %v2347_v20, %v1062_v12 }
 0xd47   :  { %v1065_v14 = vpack.c.bf16 %v1064_v13, %v1064_v13  ;;  %v2418_v13 = vld [vmem:[#allocation3 + $0x48] sm:$0xff]  }
 0xd49   :  { %1068 = vrot.lane.b32.xlu0 %v1065_v14, %s2448_s6  ;;  %v2419_v14 = vld [vmem:[#allocation3 + $0x40] sm:$0xff]  }
 0xd4c   :  { %v1030_v16 = vpop.permute.xlu1 %1029 }
 0xd4d   :  { %v2731_v17 = vmul.f32 %v2349_v61, %v1030_v16 }
 0xd4f   :  { %v1066_v15 = vpack.c.bf16 %v2731_v17, %v2731_v17 }
 0xd51   :  { %1158 = vrot.lane.b32.xlu1 %v1066_v15, %s2448_s6 }
 0xdbb   :  { %v1069_v18 = vpop.permute.xlu0 %1068 }
 0xdbc   :  { %2167 = vmatmul.mubr.msk.bf16.vlgmr.msra.gmra.mxu1 %vm186_vm1, %v1069_v18  ;;  %2175 = vmatmul.mubr.msk.bf16.vlgmr.msra.gmra.mxu0 %vm186_vm1, %v1069_v18 }
 0xdbd   :  { %2179 = vmatpush3.bf16.msra.mxu1 %v2555_v45  ;;  %2182 = vmatprep.mubr.msk.bf16.mxu1 %vm2447_vm0, %v2446_v0 }
 0xdbe   :  { %2180 = vmatprep.subr.bf16.mxu1 %v2446_v0  ;;  %2187 = vmatpush3.bf16.msra.mxu0 %v2492_v4 }
 0xdbf   :  { %2188 = vmatprep.subr.bf16.mxu0 %v2446_v0  ;;  %2190 = vmatprep.mubr.msk.bf16.mxu0 %vm2447_vm0, %v2446_v0 }
 0xdc1   :  { %2181 = vmatpush3.bf16.msra.mxu1 %v2560_v46 }
 0xdc2   :  { %2194 = vmatprep.subr.bf16.mxu1 %v2446_v0  ;;  %2189 = vmatpush3.bf16.msra.mxu0 %v2496_v5 }
 0xdc3   :  { %v1159_v19 = vpop.permute.xlu1 %1158  ;;  %2202 = vmatprep.subr.bf16.mxu0 %v2446_v0 }
 0xdc4   :  { %2183 = vmatmul.mubr.msk.bf16.vlgmr.msra.gmra.mxu1 %vm186_vm1, %v1159_v19 }
 0xdc5   :  { %2195 = vmatpush3.bf16.msra.mxu1 %v2545_v42  ;;  %2198 = vmatprep.mubr.msk.bf16.mxu1 %vm2447_vm0, %v2446_v0 }
 0xdc6   :  { %2196 = vmatprep.subr.bf16.mxu1 %v2446_v0 }
 0xdc9   :  { %2197 = vmatpush3.bf16.msra.mxu1 %v2549_v44 }
 0xdca   :  { %2210 = vmatprep.subr.bf16.mxu1 %v2446_v0 }
 0xe7c   :  { %v1107_v4 = vpop.f32.mrf.mxu1  ;;  %v1151_v21 = vpop.f32.mrf.mxu0 }
 0xe7d   :  { %v1114_v23 = vrot.slane %v1107_v4, 6  ;;  %v1152_v29 = vadd.f32 %v2581_v57, %v1151_v21 }
 0xe7e   :  { %v2168_v5 = vpop.f32.mrf.mxu1  ;;  %v2176_v26 = vpop.f32.mrf.mxu0 }
 0xe7f   :  { %v1116_v22 = vadd.f32 %v1114_v23, %v2532_v24 }
 0xe80   :  { %v1110_v27 = vpop.f32.mrf.mxu1  ;;  %v1154_v28 = vpop.f32.mrf.mxu0 }
 0xe81   :  { %2354 = vtanh.f32 %v1116_v22  ;;  %v1936_v41 = vmul.f32 -1.442695, %v1116_v22 }
 0xe82   :  { %v2169_v30 = vpop.f32.mrf.mxu1  ;;  %v2177_v31 = vpop.f32.mrf.mxu0 }
 0xe84   :  { %v1197_v33 = vpop.f32.mrf.mxu1 }
 0xe85   :  { %v1203_v34 = vadd.f32 %v1197_v33, %v1152_v29 }
 0xe86   :  { %v2184_v35 = vpop.f32.mrf.mxu1 }
 0xe87   :  { %2356 = vtanh.f32 %v1203_v34  ;;  %v1935_v43 = vmul.f32 -1.442695, %v1203_v34 }
 0xe88   :  { %v1200_v36 = vpop.f32.mrf.mxu1  ;;  %2358 = vpow2.f32 %v1936_v41 }
 0xe89   :  { %2360 = vpow2.f32 %v1935_v43 }
 0xe8a   :  { %v2185_v38 = vpop.f32.mrf.mxu1 }
 0xe8e   :  { %v2355_v39 = vpop.eup %2354 }
 0xe8f   :  { %1245 = vrot.lane.b32.xlu0 %v2355_v39, %s2444_s21 }
 0xe94   :  { %v2357_v40 = vpop.eup %2356 }
 0xe95   :  { %1213 = vrot.lane.b32.xlu1 %v2357_v40, %s2444_s21  ;;  %v2359_v47 = vpop.eup %2358 }
 0xe96   :  { %v1236_v48 = vadd.f32 1.0, %v2359_v47  ;;  %v2361_v49 = vpop.eup %2360 }
 0xe97   :  { %v1207_v50 = vadd.f32 1.0, %v2361_v49 }
 0xe98   :  { %2362 = vrcp.f32 %v1236_v48 }
 0xe99   :  { %2364 = vrcp.f32 %v1207_v50 }
 0xea5   :  { %v2363_v51 = vpop.eup %2362 }
 0xea6   :  { %v2365_v54 = vpop.eup %2364  ;;  %v1243_v20 = vmul.f32 %v2363_v51, %v1241_v58 }
 0xea7   :  { %v1211_v61 = vmul.f32 %v2365_v54, %v2725_v9 }
 0xf01   :  { %v1246_v52 = vpop.permute.xlu0 %1245 }
 0xf02   :  { %v1248_v53 = vmul.f32 %v2363_v51, %v1246_v52 }
 0xf04   :  { %1250 = vrot.lane.b32.xlu0 %v1248_v53, %s2448_s6 }
 0xf07   :  { %v1214_v55 = vpop.permute.xlu1 %1213 }
 0xf08   :  { %v1216_v56 = vmul.f32 %v2365_v54, %v1214_v55 }
 0xf0a   :  { %1218 = vrot.lane.b32.xlu1 %v1216_v56, %s2448_s6 }
 0xf76   :  { %v1251_v59 = vpop.permute.xlu0 %1250 }
 0xf77   :  { %v2764_v60 = vadd.f32 %v1251_v59, %v1243_v20 }
 0xf79   :  { %2366 = vtanh.f32 %v2764_v60 }
 0xf7c   :  { %v1219_v62 = vpop.permute.xlu1 %1218 }
 0xf7d   :  { %v2768_v63 = vadd.f32 %v1219_v62, %v1211_v61 }
 0xf7f   :  { %2368 = vtanh.f32 %v2768_v63 }
 0xf86   :  { %v2367_v1 = vpop.eup %2366 }
 0xf87   :  { %1256 = vrot.lane.b32.xlu0 %v2367_v1, %s2444_s21 }
 0xf8c   :  { %v2369_v2 = vpop.eup %2368 }
 0xf8d   :  { %1224 = vrot.lane.b32.xlu1 %v2369_v2, %s2444_s21 }
 0xff9   :  { %v1257_v3 = vpop.permute.xlu0 %1256 }
 0xffa   :  { %v1259_v6 = vmul.f32 %v2363_v51, %v1257_v3 }
 0xffc   :  { %v1260_v7 = vpack.c.bf16 %v1259_v6, %v1259_v6 }
 0xffe   :  { %v1263_v8 = vrot.slane %v1260_v7, 1 }
 0xfff   :  { %v1225_v10 = vpop.permute.xlu1 %1224 }
0x1000   :  { %v2773_v11 = vmul.f32 %v2365_v54, %v1225_v10  ;;  %1264 = vrot.lane.b32.xlu0 %v1263_v8, %s2448_s6  ;;  %v1437_v54 = vrot.slane %v2764_v60, 6 }
0x1002   :  { %v1261_v9 = vpack.c.bf16 %v2773_v11, %v2773_v11 }
0x1004   :  { %1354 = vrot.lane.b32.xlu1 %v1261_v9, %s2448_s6 }
0x1072   :  { %v1265_v12 = vpop.permute.xlu0 %1264 }
0x1073   :  { %2191 = vmatmul.mubr.msk.bf16.vlgmr.msra.gmra.mxu0 %vm186_vm1, %v1265_v12  ;;  %2199 = vmatmul.mubr.msk.bf16.vlgmr.msra.gmra.mxu1 %vm186_vm1, %v1265_v12 }
0x1074   :  { %2203 = vmatpush3.bf16.msra.mxu0 %v2555_v45  ;;  %2206 = vmatprep.mubr.msk.bf16.mxu0 %vm2447_vm0, %v2446_v0 }
0x1075   :  { %2204 = vmatprep.subr.bf16.mxu0 %v2446_v0  ;;  %2211 = vmatpush3.bf16.msra.mxu1 %v2418_v13 }
0x1076   :  { %2212 = vmatprep.subr.bf16.mxu1 %v2446_v0  ;;  %2214 = vmatprep.mubr.msk.bf16.mxu1 %vm2447_vm0, %v2446_v0  ;;  %v1355_v16 = vpop.permute.xlu1 %1354 }
0x1078   :  { %2205 = vmatpush3.bf16.msra.mxu0 %v2560_v46 }
0x1079   :  { %2218 = vmatprep.subr.bf16.mxu0 %v2446_v0  ;;  %2213 = vmatpush3.bf16.msra.mxu1 %v2419_v14 }
0x107a   :  { %2226 = vmatprep.subr.bf16.mxu1 %v2446_v0 }
0x107b   :  { %2207 = vmatmul.mubr.msk.bf16.vlgmr.msra.gmra.mxu0 %vm186_vm1, %v1355_v16 }
0x107c   :  { %2219 = vmatpush3.bf16.msra.mxu0 %v2545_v42  ;;  %2222 = vmatprep.mubr.msk.bf16.mxu0 %vm2447_vm0, %v2446_v0 }
0x107d   :  { %2220 = vmatprep.subr.bf16.mxu0 %v2446_v0 }
0x1080   :  { %2221 = vmatpush3.bf16.msra.mxu0 %v2549_v44 }
0x1081   :  { %2234 = vmatprep.subr.bf16.mxu0 %v2446_v0 }
0x1133   :  { %v1303_v15 = vpop.f32.mrf.mxu0  ;;  %v1347_v18 = vpop.f32.mrf.mxu1 }
0x1134   :  { %v1310_v19 = vrot.slane %v1303_v15, 4  ;;  %v1348_v28 = vadd.f32 %v2581_v57, %v1347_v18 }
0x1135   :  { %v2192_v4 = vpop.f32.mrf.mxu0  ;;  %v2200_v21 = vpop.f32.mrf.mxu1 }
0x1136   :  { %v1312_v23 = vadd.f32 %v1310_v19, %v2532_v24 }
0x1137   :  { %v1306_v5 = vpop.f32.mrf.mxu0  ;;  %v1350_v26 = vpop.f32.mrf.mxu1 }
0x1138   :  { %2370 = vtanh.f32 %v1312_v23  ;;  %v1941_v38 = vmul.f32 -1.442695, %v1312_v23 }
0x1139   :  { %v2193_v22 = vpop.f32.mrf.mxu0  ;;  %v2201_v27 = vpop.f32.mrf.mxu1 }
0x113b   :  { %v1393_v30 = vpop.f32.mrf.mxu0 }
0x113c   :  { %v1399_v31 = vadd.f32 %v1393_v30, %v1348_v28 }
0x113d   :  { %v2208_v29 = vpop.f32.mrf.mxu0 }
0x113e   :  { %2372 = vtanh.f32 %v1399_v31  ;;  %v1940_v39 = vmul.f32 -1.442695, %v1399_v31 }
0x113f   :  { %v1396_v33 = vpop.f32.mrf.mxu0  ;;  %2374 = vpow2.f32 %v1941_v38 }
0x1140   :  { %2376 = vpow2.f32 %v1940_v39 }
0x1141   :  { %v2209_v34 = vpop.f32.mrf.mxu0 }
0x1145   :  { %v2371_v35 = vpop.eup %2370 }
0x1146   :  { %1441 = vrot.lane.b32.xlu0 %v2371_v35, %s2444_s21 }
0x114b   :  { %v2373_v36 = vpop.eup %2372 }
0x114c   :  { %1409 = vrot.lane.b32.xlu1 %v2373_v36, %s2444_s21  ;;  %v2375_v40 = vpop.eup %2374 }
0x114d   :  { %v1432_v41 = vadd.f32 1.0, %v2375_v40  ;;  %v2377_v43 = vpop.eup %2376 }
0x114e   :  { %v1403_v47 = vadd.f32 1.0, %v2377_v43 }
0x114f   :  { %2378 = vrcp.f32 %v1432_v41 }
0x1150   :  { %2380 = vrcp.f32 %v1403_v47 }
0x115c   :  { %v2379_v48 = vpop.eup %2378 }
0x115d   :  { %v2381_v51 = vpop.eup %2380  ;;  %v1439_v55 = vmul.f32 %v2379_v48, %v1437_v54 }
0x115e   :  { %v1407_v20 = vmul.f32 %v2381_v51, %v2768_v63 }
0x11b8   :  { %v1442_v49 = vpop.permute.xlu0 %1441 }
0x11b9   :  { %v1444_v50 = vmul.f32 %v2379_v48, %v1442_v49 }
0x11bb   :  { %1446 = vrot.lane.b32.xlu0 %v1444_v50, %s2448_s6 }
0x11be   :  { %v1410_v52 = vpop.permute.xlu1 %1409 }
0x11bf   :  { %v1412_v53 = vmul.f32 %v2381_v51, %v1410_v52 }
0x11c1   :  { %1414 = vrot.lane.b32.xlu1 %v1412_v53, %s2448_s6 }
0x122d   :  { %v1447_v56 = vpop.permute.xlu0 %1446 }
0x122e   :  { %v2805_v58 = vadd.f32 %v1447_v56, %v1439_v55 }
0x1230   :  { %2382 = vtanh.f32 %v2805_v58  ;;  %v1633_v40 = vrot.slane %v2805_v58, 6 }
0x1233   :  { %v1415_v59 = vpop.permute.xlu1 %1414 }
0x1234   :  { %v2809_v61 = vadd.f32 %v1415_v59, %v1407_v20 }
0x1236   :  { %2384 = vtanh.f32 %v2809_v61 }
0x123d   :  { %v2383_v62 = vpop.eup %2382 }
0x123e   :  { %1452 = vrot.lane.b32.xlu0 %v2383_v62, %s2444_s21 }
0x1243   :  { %v2385_v1 = vpop.eup %2384 }
0x1244   :  { %1420 = vrot.lane.b32.xlu1 %v2385_v1, %s2444_s21 }
0x12b0   :  { %v1453_v60 = vpop.permute.xlu0 %1452 }
0x12b1   :  { %v1455_v2 = vmul.f32 %v2379_v48, %v1453_v60 }
0x12b3   :  { %v1456_v3 = vpack.c.bf16 %v1455_v2, %v1455_v2  ;;  %v2420_v2 = vld [vmem:[%s2923_s2 + $0x1] ss:$0 sm:$0xff] }
0x12b5   :  { %v1459_v6 = vrot.slane %v1456_v3, 2 }
0x12b6   :  { %v1421_v7 = vpop.permute.xlu1 %1420 }
0x12b7   :  { %v2814_v8 = vmul.f32 %v2381_v51, %v1421_v7  ;;  %1460 = vrot.lane.b32.xlu0 %v1459_v6, %s2448_s6 }
0x12b9   :  { %v1457_v63 = vpack.c.bf16 %v2814_v8, %v2814_v8 }
0x12bb   :  { %1550 = vrot.lane.b32.xlu1 %v1457_v63, %s2448_s6 }
0x1329   :  { %v1461_v10 = vpop.permute.xlu0 %1460 }
0x132a   :  { %2215 = vmatmul.mubr.msk.bf16.vlgmr.msra.gmra.mxu1 %vm186_vm1, %v1461_v10  ;;  %2223 = vmatmul.mubr.msk.bf16.vlgmr.msra.gmra.mxu0 %vm186_vm1, %v1461_v10 }
0x132b   :  { %2227 = vmatpush3.bf16.msra.mxu1 %v2555_v45  ;;  %2230 = vmatprep.mubr.msk.bf16.mxu1 %vm2447_vm0, %v2446_v0 }
0x132c   :  { %2228 = vmatprep.subr.bf16.mxu1 %v2446_v0  ;;  %2235 = vmatpush3.bf16.msra.mxu0 %v2545_v42 }
0x132d   :  { %2236 = vmatprep.subr.bf16.mxu0 %v2446_v0  ;;  %2238 = vmatprep.mubr.msk.bf16.mxu0 %vm2447_vm0, %v2446_v0  ;;  %v1551_v9 = vpop.permute.xlu1 %1550 }
0x132f   :  { %2229 = vmatpush3.bf16.msra.mxu1 %v2560_v46 }
0x1330   :  { %2242 = vmatprep.subr.bf16.mxu1 %v2446_v0  ;;  %2237 = vmatpush3.bf16.msra.mxu0 %v2549_v44 }
0x1331   :  { %2250 = vmatprep.subr.bf16.mxu0 %v2446_v0 }
0x1332   :  { %2231 = vmatmul.mubr.msk.bf16.vlgmr.msra.gmra.mxu1 %vm186_vm1, %v1551_v9 }
0x1333   :  { %2243 = vmatpush3.bf16.msra.mxu1 %v2555_v45  ;;  %2246 = vmatprep.mubr.msk.bf16.mxu1 %vm2447_vm0, %v2446_v0 }
0x1334   :  { %2244 = vmatprep.subr.bf16.mxu1 %v2446_v0 }
0x1337   :  { %2245 = vmatpush3.bf16.msra.mxu1 %v2560_v46 }
0x13ea   :  { %v1499_v42 = vpop.f32.mrf.mxu1  ;;  %v1543_v12 = vpop.f32.mrf.mxu0 }
0x13eb   :  { %v1506_v13 = vrot.slane %v1499_v42, 2  ;;  %v1544_v45 = vadd.f32 %v2581_v57, %v1543_v12 }
0x13ec   :  { %v2216_v14 = vpop.f32.mrf.mxu1  ;;  %v2224_v16 = vpop.f32.mrf.mxu0 }
0x13ed   :  { %v1508_v44 = vadd.f32 %v1506_v13, %v2532_v24 }
0x13ee   :  { %v1502_v15 = vpop.f32.mrf.mxu1  ;;  %v1546_v18 = vpop.f32.mrf.mxu0 }
0x13ef   :  { %2386 = vtanh.f32 %v1508_v44  ;;  %v1946_v24 = vmul.f32 -1.442695, %v1508_v44 }
0x13f0   :  { %v2217_v19 = vpop.f32.mrf.mxu1  ;;  %v2225_v4 = vpop.f32.mrf.mxu0 }
0x13f2   :  { %v1589_v21 = vpop.f32.mrf.mxu1 }
0x13f3   :  { %v1595_v23 = vadd.f32 %v1589_v21, %v1544_v45 }
0x13f4   :  { %v2232_v5 = vpop.f32.mrf.mxu1 }
0x13f5   :  { %2388 = vtanh.f32 %v1595_v23  ;;  %v1945_v28 = vmul.f32 -1.442695, %v1595_v23 }
0x13f6   :  { %v1592_v26 = vpop.f32.mrf.mxu1  ;;  %2390 = vpow2.f32 %v1946_v24 }
0x13f7   :  { %2392 = vpow2.f32 %v1945_v28 }
0x13f8   :  { %v2233_v46 = vpop.f32.mrf.mxu1 }
0x13f9   :  { %v2281_v46 = vld [vmem:[#allocation3 + $0x70] sm:$0xff]  }
0x13fc   :  { %v2387_v22 = vpop.eup %2386 }
0x13fd   :  { %1637 = vrot.lane.b32.xlu0 %v2387_v22, %s2444_s21 }
0x1402   :  { %v2389_v27 = vpop.eup %2388 }
0x1403   :  { %1605 = vrot.lane.b32.xlu1 %v2389_v27, %s2444_s21  ;;  %v2391_v30 = vpop.eup %2390 }
0x1404   :  { %v1628_v31 = vadd.f32 1.0, %v2391_v30  ;;  %v2393_v29 = vpop.eup %2392 }
0x1405   :  { %v1599_v57 = vadd.f32 1.0, %v2393_v29 }
0x1406   :  { %2394 = vrcp.f32 %v1628_v31  ;;  %v1950_v31 = vld [vmem:[%s2923_s2 + $0x2] ss:$0 sm:$0xff] }
0x1407   :  { %2396 = vrcp.f32 %v1599_v57 }
0x1413   :  { %v2395_v33 = vpop.eup %2394 }
0x1414   :  { %v2397_v36 = vpop.eup %2396  ;;  %v1635_v41 = vmul.f32 %v2395_v33, %v1633_v40 }
0x1415   :  { %v1603_v48 = vmul.f32 %v2397_v36, %v2809_v61 }
0x146f   :  { %v1638_v34 = vpop.permute.xlu0 %1637 }
0x1470   :  { %v1640_v35 = vmul.f32 %v2395_v33, %v1638_v34 }
0x1472   :  { %1642 = vrot.lane.b32.xlu0 %v1640_v35, %s2448_s6 }
0x1475   :  { %v1606_v38 = vpop.permute.xlu1 %1605 }
0x1476   :  { %v1608_v39 = vmul.f32 %v2397_v36, %v1606_v38 }
0x1478   :  { %1610 = vrot.lane.b32.xlu1 %v1608_v39, %s2448_s6 }
0x14e4   :  { %v1643_v43 = vpop.permute.xlu0 %1642 }
0x14e5   :  { %v2847_v47 = vadd.f32 %v1643_v43, %v1635_v41 }
0x14e7   :  { %2398 = vtanh.f32 %v2847_v47 }
0x14ea   :  { %v1611_v49 = vpop.permute.xlu1 %1610 }
0x14eb   :  { %v1613_v50 = vadd.f32 %v1611_v49, %v1603_v48 }
0x14ed   :  { %2400 = vtanh.f32 %v1613_v50 }
0x14f4   :  { %v2399_v51 = vpop.eup %2398 }
0x14f5   :  { %1648 = vrot.lane.b32.xlu0 %v2399_v51, %s2444_s21 }
0x14fa   :  { %v2401_v52 = vpop.eup %2400 }
0x14fb   :  { %1616 = vrot.lane.b32.xlu1 %v2401_v52, %s2444_s21 }
0x1567   :  { %v1649_v53 = vpop.permute.xlu0 %1648 }
0x1568   :  { %v2853_v54 = vmul.f32 %v2395_v33, %v1649_v53 }
0x156a   :  { %v1652_v55 = vpack.c.bf16 %v2853_v54, %v2853_v54 }
0x156c   :  { %v1654_v56 = vrot.slane %v1652_v55, 3 }
0x156d   :  { %v1617_v58 = vpop.permute.xlu1 %1616 }
0x156e   :  { %v1619_v20 = vmul.f32 %v2397_v36, %v1617_v58  ;;  %1655 = vrot.lane.b32.xlu0 %v1654_v56, %s2448_s6 }
0x1570   :  { %v1700_v59 = vpack.c.bf16 %v1619_v20, %v1619_v20 }
0x1572   :  { %1702 = vrot.lane.b32.xlu1 %v1700_v59, %s2448_s6 }
0x15e0   :  { %v1656_v61 = vpop.permute.xlu0 %1655 }
0x15e1   :  { %2239 = vmatmul.mubr.msk.bf16.vlgmr.msra.gmra.mxu0 %vm186_vm1, %v1656_v61 }
0x15e2   :  { %2254 = vmatprep.mubr.msk.bf16.mxu0 %vm2447_vm0, %v2446_v0 }
0x15e4   :  { %v1703_v62 = vpop.permute.xlu1 %1702 }
0x15e5   :  { %2247 = vmatmul.mubr.msk.bf16.vlgmr.msra.gmra.mxu1 %vm186_vm1, %v1703_v62 }
0x16a1   :  { %v1694_v1 = vpop.f32.mrf.mxu0 }
0x16a2   :  { %v1695_v3 = vadd.f32 %v2420_v2, %v1694_v1 }
0x16a3   :  { %v2240_v60 = vpop.f32.mrf.mxu0 }
0x16a5   :  { %v1697_v6 = vpop.f32.mrf.mxu0  ;;  %v1741_v7 = vpop.f32.mrf.mxu1 }
0x16a6   :  { %v1747_v63 = vadd.f32 %v1741_v7, %v1695_v3 }
0x16a7   :  { %v2241_v10 = vpop.f32.mrf.mxu0  ;;  %v2248_v9 = vpop.f32.mrf.mxu1 }
0x16a8   :  { %2402 = vtanh.f32 %v1747_v63  ;;  %v1949_v14 = vmul.f32 -1.442695, %v1747_v63 }
0x16a9   :  { %v1744_v42 = vpop.f32.mrf.mxu1 }
0x16aa   :  { %2404 = vpow2.f32 %v1949_v14 }
0x16ab   :  { %v2249_v12 = vpop.f32.mrf.mxu1 }
0x16b5   :  { %v2403_v13 = vpop.eup %2402 }
0x16b6   :  { %1757 = vrot.lane.b32.xlu0 %v2403_v13, %s2444_s21 }
0x16b7   :  { %v2405_v16 = vpop.eup %2404 }
0x16b8   :  { %v1751_v44 = vadd.f32 1.0, %v2405_v16 }
0x16ba   :  { %2406 = vrcp.f32 %v1751_v44 }
0x16c7   :  { %v2407_v15 = vpop.eup %2406 }
0x16c8   :  { %v1755_v4 = vmul.f32 %v2407_v15, %v1613_v50 }
0x1728   :  { %v1758_v18 = vpop.permute.xlu0 %1757 }
0x1729   :  { %v1760_v19 = vmul.f32 %v2407_v15, %v1758_v18 }
0x172b   :  { %1762 = vrot.lane.b32.xlu1 %v1760_v19, %s2448_s6 }
0x172f   :  { %448 = vrot.lane.b32.xlu1 %v2602_v37, %s2448_s6 }
0x1733   :  { %841 = vrot.lane.b32.xlu1 %v2687_v25, %s2448_s6 }
0x1737   :  { %1229 = vrot.lane.b32.xlu1 %v2773_v11, %s2448_s6  ;;  %v2280_v11 = vld [vmem:[#allocation3 + $0x78] sm:$0xff]  }
0x1738   :  { %2251 = vmatpush3.bf16.msra.mxu0 %v2280_v11 }
0x1739   :  { %2252 = vmatprep.subr.bf16.mxu0 %v2446_v0 }
0x173b   :  { %1621 = vrot.lane.b32.xlu1 %v1619_v20, %s2448_s6 }
0x173c   :  { %2253 = vmatpush3.bf16.msra.mxu0 %v2281_v46 }
0x179d   :  { %v1763_v45 = vpop.permute.xlu1 %1762 }
0x179e   :  { %v1765_v21 = vadd.f32 %v1763_v45, %v1755_v4 }
0x17a0   :  { %2408 = vtanh.f32 %v1765_v21 }
0x17a1   :  { %v449_v23 = vpop.permute.xlu1 %448 }
0x17a2   :  { %452 = vst.msk [vmem:[#allocation2] sm:$0x3] %vm451_vm2, %v449_v23 }
0x17a5   :  { %v842_v5 = vpop.permute.xlu1 %841 }
0x17a6   :  { %844 = vst.msk [vmem:[#allocation2 + $0x4] sm:$0x3] %vm451_vm2, %v842_v5 }
0x17a9   :  { %v1230_v37 = vpop.permute.xlu1 %1229 }
0x17aa   :  { %1232 = vst.msk [vmem:[#allocation2 + $0x8] sm:$0x3] %vm451_vm2, %v1230_v37 }
0x17ad   :  { %v2409_v25 = vpop.eup %2408  ;;  %v1622_v26 = vpop.permute.xlu1 %1621 }
0x17ae   :  { %1624 = vst.msk [vmem:[#allocation2 + $0xc] sm:$0x3] %vm451_vm2, %v1622_v26  ;;  %1768 = vrot.lane.b32.xlu0 %v2409_v25, %s2444_s21 }
0x17b2   :  { %645 = vrot.lane.b32.xlu0 %v2645_v32, %s2448_s6 }
0x17b6   :  { %1034 = vrot.lane.b32.xlu0 %v2731_v17, %s2448_s6 }
0x17ba   :  { %1425 = vrot.lane.b32.xlu0 %v2814_v8, %s2448_s6 }
0x1820   :  { %v1769_v22 = vpop.permute.xlu0 %1768 }
0x1821   :  { %v1771_v27 = vmul.f32 %v2407_v15, %v1769_v22 }
0x1823   :  { %1773 = vrot.lane.b32.xlu0 %v1771_v27, %s2448_s6 }
0x1824   :  { %v646_v24 = vpop.permute.xlu0 %645 }
0x1825   :  { %648 = vst.msk [vmem:[#allocation2 + $0x2] sm:$0x3] %vm451_vm2, %v646_v24 }
0x1828   :  { %v1035_v32 = vpop.permute.xlu0 %1034 }
0x1829   :  { %1037 = vst.msk [vmem:[#allocation2 + $0x6] sm:$0x3] %vm451_vm2, %v1035_v32 }
0x182c   :  { %v1426_v17 = vpop.permute.xlu0 %1425 }
0x182d   :  { %1428 = vst.msk [vmem:[#allocation2 + $0xa] sm:$0x3] %vm451_vm2, %v1426_v17 }
0x1830   :  { %v1799_v0 = vld [vmem:[#allocation2] sm:$0xff] }
0x1895   :  { %v1774_v8 = vpop.permute.xlu0 %1773 }
0x1896   :  { %1776 = vst.msk [vmem:[#allocation2 + $0xe] sm:$0x3] %vm451_vm2, %v1774_v8  ;;  %1783 = vst.msk [vmem:[%s2926_s5 + $0x2] sm:$0x3] %vm451_vm2, %v1774_v8 }
0x189d   :  { %v1800_v28 = vld [vmem:[#allocation2 + $0x8] sm:$0xff] }
0x189e   :  { %v1801_v30 = vpack.c.bf16 %v1800_v28, %v1799_v0 }
0x18a0   :  { %2255 = vmatmul.mubr.msk.bf16.vlgmr.msra.gmra.mxu0 %vm186_vm1, %v1801_v30 }
0x1960   :  { %v1855_v29 = vpop.f32.mrf.mxu0 }
0x1961   :  { %v1856_v57 = vadd.f32 %v1950_v31, %v1855_v29 }
0x1962   :  { %v2256_v33 = vpop.f32.mrf.mxu0 }
0x1963   :  { %1862 = vmax.xlane.f32.xlu1 %v1856_v57 }
0x1964   :  { %v1858_v34 = vpop.f32.mrf.mxu0 }
0x1965   :  { %v1859_v35 = vadd.f32 %v1950_v31, %v1858_v34 }
0x1966   :  { %v2257_v36 = vpop.f32.mrf.mxu0 }
0x1967   :  { %1864 = vmax.xlane.f32.xlu0 %v1859_v35 }
0x1974   :  { %1785 = vrot.lane.b32.xlu1 %v2847_v47, %s2449_s18 }
0x19ec   :  { %v1863_v38 = vpop.xlane.xlu1 %1862 }
0x19ed   :  { %v1866_v39 = vsub.f32 %v1856_v57, %v1863_v38 }
0x19ef   :  { %v1868_v40 = vmul.f32 1.442695, %v1866_v39 }
0x19f0   :  { %v1786_v41 = vpop.permute.xlu1 %1785  ;;  %v1865_v43 = vpop.xlane.xlu0 %1864 }
0x19f1   :  { %2410 = vpow2.f32 %v1868_v40  ;;  %1788 = vst.msk [vmem:[%s2926_s5 - $0x2] sm:$0xc0] %vm1781_vm3, %v1786_v41  ;;  %v1867_v48 = vsub.f32 %v1859_v35, %v1865_v43 }
0x19f3   :  { %v1870_v49 = vmul.f32 1.442695, %v1867_v48 }
0x19f5   :  { %2412 = vpow2.f32 %v1870_v49 }
0x19fe   :  { %v2411_v50 = vpop.eup %2410 }
0x19ff   :  { %1872 = vadd.xlane.f32.xlu0 %v2411_v50 }
0x1a02   :  { %v2413_v51 = vpop.eup %2412 }
0x1a03   :  { %1874 = vadd.xlane.f32.xlu1 %v2413_v51 }
0x1a14   :  { %1790 = vrot.lane.b32.xlu1 %v1765_v21, %s2449_s18 }
0x1a15   :  { %1778 = vrot.lane.b32.xlu0 %v2853_v54, %s2448_s6 }
0x1a88   :  { %v1873_v47 = vpop.xlane.xlu0 %1872 }
0x1a89   :  { %2414 = vlog2.f32 %v1873_v47 }
0x1a8c   :  { %v1875_v52 = vpop.xlane.xlu1 %1874  ;;  %v1779_v53 = vpop.permute.xlu0 %1778 }
0x1a8d   :  { %2416 = vlog2.f32 %v1875_v52  ;;  %1782 = vst.msk [vmem:[%s2926_s5 - $0x6] sm:$0xc0] %vm1781_vm3, %v1779_v53 }
0x1a90   :  { %v1791_v55 = vpop.permute.xlu1 %1790 }
0x1a91   :  { %1793 = vst.msk [vmem:[%s2926_s5 + $0x6] sm:$0x3] %vm451_vm2, %v1791_v55 }
0x1a96   :  { %v2415_v56 = vpop.eup %2414 }
0x1a97   :  { %v1877_v58 = vmul.f32 0.6931472, %v2415_v56 }
0x1a99   :  { %v1880_v20 = vsub.f32 %v1866_v39, %v1877_v58 }
0x1a9a   :  { %v2417_v54 = vpop.eup %2416 }
0x1a9b   :  { %1882 = vst [vmem:[%s2925_s4] sm:$0xff] %v1880_v20  ;;  %v1879_v59 = vmul.f32 0.6931472, %v2417_v54 }
0x1a9d   :  { %v1881_v61 = vsub.f32 %v1867_v48, %v1879_v59 }
0x1a9f   :  { %1883 = vst [vmem:[%s2925_s4 + $0x8] sm:$0xff] %v1881_v61 }
0x1aa0   :  { %1892 = vsyncpa [#allocation4], 1 }

</bundles_post_ra>
